<compile_context>
chip_gen: v7x
topology: tpu7x:2x2x1
jax: 0.10.0
libtpu: 0.0.40
codegen_flags: <defaults>
</compile_context>

<pallas_src>
import functools
import math

import jax
import jax.numpy as jnp
from jax.experimental import pallas as pl
from jax.experimental.pallas import tpu as pltpu


# ----------------------------- Pallas kernel --------------------------------

def _scalar_mlp(x2d, w1, b1, w2):
    # Elementwise 1 -> N -> 1 MLP (distilled exp / inv approximators).
    # The final output bias is baked in as an extra neuron (w1=0, b1=1, w2=b2)
    # at param-preprocessing time, so no explicit bias add is needed here.
    # x2d: (R, C); w1/b1/w2: (1, N)
    h = jnp.maximum(x2d[:, :, None] * w1[None] + b1[None], 0.0)   # (R, C, N)
    return jnp.sum(h * w2[None], axis=-1)                         # (R, C)


def _fused_attn_kernel(x_ref, wqkv_ref, bqkv_ref, wo_ref, bo_ref,
                       exp_ref, inv_ref, o_ref, *, S, E, nh, hd):
    # One batch element per grid step; all nh heads handled here.
    x = x_ref[0]                                                   # (S, E)

    # Fused QKV projection: (S, E) @ (E, 3E) + (1, 3E)
    qkv = jnp.dot(x, wqkv_ref[...],
                  preferred_element_type=jnp.float32) + bqkv_ref[...]   # (S, 3E)

    # Per-head scores, stacked along sublanes -> (nh*S, S)
    scale = 1.0 / math.sqrt(hd)
    p_blocks = []
    for h in range(nh):
        q_h = qkv[:, h * hd:(h + 1) * hd]                          # (S, hd)
        k_h = qkv[:, E + h * hd:E + (h + 1) * hd]                  # (S, hd)
        p_blocks.append(jnp.dot(q_h, k_h.T,
                                preferred_element_type=jnp.float32))
    p_all = jnp.concatenate(p_blocks, axis=0) * scale              # (nh*S, S)

    # fit_softmax (faithful to the reference: "tmax" is the element at column
    # 0, NOT the row max; upper clamp at 3; mask below -20).
    tmax = p_all[:, 0:1]
    tp = jnp.minimum(p_all - (tmax - 1.0), 3.0)

    ew1, eb1, ew2 = exp_ref[0:1, :], exp_ref[1:2, :], exp_ref[2:3, :]
    iw1, ib1, iw2 = inv_ref[0:1, :], inv_ref[1:2, :], inv_ref[2:3, :]

    x_up = jnp.where(tp > -20.0, _scalar_mlp(tp, ew1, eb1, ew2), 0.0)
    partition = jnp.sum(x_up, axis=-1, keepdims=True)              # (nh*S, 1)
    p_inv = _scalar_mlp(partition, iw1, ib1, iw2)                  # (nh*S, 1)
    out = x_up * p_inv
    partition2 = jnp.sum(out, axis=-1, keepdims=True)              # (nh*S, 1)
    p_inv2 = _scalar_mlp(partition2, iw1, ib1, iw2)                # (nh*S, 1)
    m = jnp.where(partition2 > 1.5, out * p_inv2, out)

    # spike_x2x_pos (ANN path) == ReLU
    m = jnp.maximum(m, 0.0)

    # m @ v per head, fused with the output projection:
    #   ctx[:, h*hd:(h+1)*hd] = m_h @ v_h ;  y = ctx @ Wo.T + bo
    # == sum_h (m_h @ v_h) @ Wo.T[h*hd:(h+1)*hd, :] + bo
    # (spike_x2x relu(x)-relu(-x) identity elided — ANN path only.)
    wo = wo_ref[...]                                               # (E, E)
    acc = jnp.zeros((S, E), jnp.float32)
    for h in range(nh):
        m_h = m[h * S:(h + 1) * S, :]                              # (S, S)
        v_h = qkv[:, 2 * E + h * hd:2 * E + (h + 1) * hd]          # (S, hd)
        o_h = jnp.dot(m_h, v_h, preferred_element_type=jnp.float32)
        acc = acc + jnp.dot(o_h, wo[h * hd:(h + 1) * hd, :],
                            preferred_element_type=jnp.float32)
    o_ref[0] = acc + bo_ref[...]                                   # (S, E)


# ------------------------------- wrapper -------------------------------------

def preprocess_params(params):
    """Hoisted (done once): fuse QKV weights, transpose Wo, pack MLP params."""
    f32 = jnp.float32
    wqkv_t = jnp.concatenate(
        [params["wq"], params["wk"], params["wv"]], axis=0).T.astype(f32)   # (E, 3E)
    bqkv = jnp.concatenate(
        [params["bq"], params["bk"], params["bv"]])[None, :].astype(f32)    # (1, 3E)
    wo_t = params["wo"].T.astype(f32)                                       # (E, E)
    bo = params["bo"][None, :].astype(f32)                                  # (1, E)

    def pack_mlp(w1, b1, w2, b2):
        # Bake the final bias b2 in as one extra neuron: relu(x*0 + 1) * b2 == b2
        w1e = jnp.concatenate([w1, jnp.zeros((1, 1), f32)], axis=1)
        b1e = jnp.concatenate([b1, jnp.ones((1, 1), f32)], axis=1)
        w2e = jnp.concatenate([w2, b2.reshape(1, 1)], axis=1)
        return jnp.concatenate([w1e, b1e, w2e], axis=0).astype(f32)   # (3, N+1)

    exp_pack = pack_mlp(params["exp_w1"], params["exp_b1"],
                        params["exp_w2"], params["exp_b2"])
    inv_pack = pack_mlp(params["inv_w1"], params["inv_b1"],
                        params["inv_w2"], params["inv_b2"])
    return dict(num_heads=params["num_heads"], wqkv_t=wqkv_t, bqkv=bqkv,
                wo_t=wo_t, bo=bo, exp_pack=exp_pack, inv_pack=inv_pack)


def spike_attention_forward(x, k_unused, v_unused, prepped):
    """x: (seq_len, batch, embed). k/v args are unused by the PyTorch module too."""
    del k_unused, v_unused
    S, B, E = x.shape
    nh = prepped["num_heads"]
    hd = E // nh
    f32 = jnp.float32

    # seq-first -> batch-first for per-batch grid blocks (tiny XLA transpose).
    x_bse = x.transpose(1, 0, 2).astype(f32)                       # (B, S, E)

    exp_pack = prepped["exp_pack"]
    inv_pack = prepped["inv_pack"]
    EN1 = exp_pack.shape[1]
    IN1 = inv_pack.shape[1]

    kernel = functools.partial(_fused_attn_kernel, S=S, E=E, nh=nh, hd=hd)

    def whole(shape):
        return pl.BlockSpec(shape, lambda b, _n=len(shape): (0,) * _n)

    out = pl.pallas_call(
        kernel,
        out_shape=jax.ShapeDtypeStruct((B, S, E), f32),
        grid=(B,),
        in_specs=[pl.BlockSpec((1, S, E), lambda b: (b, 0, 0)),
                  whole((E, 3 * E)), whole((1, 3 * E)),
                  whole((E, E)), whole((1, E)),
                  whole((3, EN1)), whole((3, IN1))],
        out_specs=pl.BlockSpec((1, S, E), lambda b: (b, 0, 0)),
        compiler_params=pltpu.CompilerParams(
            dimension_semantics=("parallel",)),
    )(x_bse, prepped["wqkv_t"], prepped["bqkv"], prepped["wo_t"], prepped["bo"],
      exp_pack, inv_pack)

    return out.transpose(1, 0, 2), None                            # (S, B, E)


# --------------------------- pure-JAX reference ------------------------------

def _mlp_ref(x, w1, b1, w2, b2):
    h = jnp.maximum(x[..., None] * w1[0] + b1[0], 0.0)
    return jnp.sum(h * w2[0], axis=-1) + b2[0, 0]


def reference_forward(x, params):
    S, B, E = x.shape
    nh = params["num_heads"]
    hd = E // nh
    hp = jax.lax.Precision.HIGHEST

    def lin(t, w, b):
        return jnp.einsum("sbe,oe->sbo", t, w, precision=hp) + b

    q = lin(x, params["wq"], params["bq"])
    k = lin(x, params["wk"], params["bk"])
    v = lin(x, params["wv"], params["bv"])

    def heads(t):
        return t.reshape(S, B * nh, hd).transpose(1, 0, 2)

    q, k, v = heads(q), heads(k), heads(v)
    p = jnp.einsum("bsd,btd->bst", q, k, precision=hp) / math.sqrt(hd)

    tmax = p[:, :, 0:1]
    tp = jnp.minimum(p - (tmax - 1.0), 3.0)
    xu = jnp.where(tp > -20.0,
                   _mlp_ref(tp, params["exp_w1"], params["exp_b1"],
                            params["exp_w2"], params["exp_b2"]), 0.0)
    part = jnp.sum(xu, -1, keepdims=True)
    pinv = _mlp_ref(part, params["inv_w1"], params["inv_b1"],
                    params["inv_w2"], params["inv_b2"])
    out = xu * pinv
    part2 = jnp.sum(out, -1, keepdims=True)
    pinv2 = _mlp_ref(part2, params["inv_w1"], params["inv_b1"],
                     params["inv_w2"], params["inv_b2"])
    m = jnp.where(part2 > 1.5, out * pinv2, out)
    m = jnp.maximum(m, 0.0)

    o = jnp.einsum("bst,btd->bsd", m, v, precision=hp)
    o = o.transpose(1, 0, 2).reshape(S, B, E)
    o = jnp.maximum(o, 0.0) - jnp.maximum(-o, 0.0)
    o = jnp.einsum("sbe,oe->sbo", o, params["wo"], precision=hp) + params["bo"]
    return o


# ------------------------------- params --------------------------------------

def make_params(key, embed=32, num_heads=4, exp_neurons=32, inv_neurons=64):
    # Deterministic synthetic init (checkpoints for the distilled exp/inv MLPs
    # are replaced by random weights).
    ks = jax.random.split(key, 16)
    E = embed

    def nrm(k, shape, scale):
        return (scale * jax.random.normal(k, shape)).astype(jnp.float32)

    return dict(
        num_heads=num_heads,
        wq=nrm(ks[0], (E, E), 0.1), bq=nrm(ks[1], (E,), 0.05),
        wk=nrm(ks[2], (E, E), 0.1), bk=nrm(ks[3], (E,), 0.05),
        wv=nrm(ks[4], (E, E), 0.1), bv=nrm(ks[5], (E,), 0.05),
        wo=nrm(ks[6], (E, E), 0.1), bo=nrm(ks[7], (E,), 0.05),
        # distilled_exp: Linear(1, 32) -> ReLU -> Linear(32, 1)
        exp_w1=nrm(ks[8], (1, exp_neurons), 0.5),
        exp_b1=nrm(ks[9], (1, exp_neurons), 0.5),
        exp_w2=nrm(ks[10], (1, exp_neurons), 0.5),
        exp_b2=nrm(ks[11], (1, 1), 0.5),
        # distilled_inv: Linear(1, 64) -> ReLU -> Linear(64, 1)
        inv_w1=nrm(ks[12], (1, inv_neurons), 0.5),
        inv_b1=nrm(ks[13], (1, inv_neurons), 0.5),
        inv_w2=nrm(ks[14], (1, inv_neurons), 0.5),
        inv_b2=nrm(ks[15], (1, 1), 0.5),
    )


# --------------------------------- main ---------------------------------------

if __name__ == "__main__":
    key = jax.random.PRNGKey(0)
    k_x, k_p = jax.random.split(key)

    S, B, E, NH = 8, 2, 32, 4          # seq_len, batch, embed, num_heads
    params = make_params(k_p, embed=E, num_heads=NH)
    prepped = preprocess_params(params)   # hoisted weight preprocessing (once)
    x = jax.random.normal(k_x, (S, B, E), dtype=jnp.float32)

    out, attn_w = spike_attention_forward(x, x, x, prepped)
    out = jax.block_until_ready(out)

    assert out.shape == (S, B, E)
    assert attn_w is None

    ref = reference_forward(x, params)
    err = float(jnp.max(jnp.abs(out - ref)))
    if err > 1e-2:
        raise AssertionError(f"mismatch vs reference: max abs err {err}")

    print("KERNEL_OK")
</pallas_src>

<mosaic_0001>
module attributes {stable_mosaic.version = 11 : i64} {
  func.func @_fused_attn_kernel(%arg0: i32, %arg1: memref<1x8x32xf32, #tpu.memory_space<vmem>>, %arg2: memref<32x96xf32, #tpu.memory_space<vmem>>, %arg3: memref<1x96xf32, #tpu.memory_space<vmem>>, %arg4: memref<32x32xf32, #tpu.memory_space<vmem>>, %arg5: memref<1x32xf32, #tpu.memory_space<vmem>>, %arg6: memref<3x33xf32, #tpu.memory_space<vmem>>, %arg7: memref<3x65xf32, #tpu.memory_space<vmem>>, %arg8: memref<1x8x32xf32, #tpu.memory_space<vmem>>) attributes {dimension_semantics = [#tpu.dimension_semantics<parallel>], iteration_bounds = array<i64: 2>, scalar_prefetch = 0 : i64, scratch_operands = 0 : i64, tpu.core_type = #tpu.core_type<tc>, window_params = [{transform_indices = @transform_0, window_bounds = array<i64: 1, 8, 32>}, {pipeline_mode = #tpu.pipeline_mode<synchronous>, transform_indices = @transform_1, window_bounds = array<i64: 32, 96>}, {pipeline_mode = #tpu.pipeline_mode<synchronous>, transform_indices = @transform_2, window_bounds = array<i64: 1, 96>}, {pipeline_mode = #tpu.pipeline_mode<synchronous>, transform_indices = @transform_3, window_bounds = array<i64: 32, 32>}, {pipeline_mode = #tpu.pipeline_mode<synchronous>, transform_indices = @transform_4, window_bounds = array<i64: 1, 32>}, {pipeline_mode = #tpu.pipeline_mode<synchronous>, transform_indices = @transform_5, window_bounds = array<i64: 3, 33>}, {pipeline_mode = #tpu.pipeline_mode<synchronous>, transform_indices = @transform_6, window_bounds = array<i64: 3, 65>}, {transform_indices = @transform_7, window_bounds = array<i64: 1, 8, 32>}]} {
    %c0 = arith.constant 0 : index
    %c0_0 = arith.constant 0 : index
    %c0_1 = arith.constant 0 : index
    %0 = vector.load %arg1[%c0, %c0_0, %c0_1] : memref<1x8x32xf32, #tpu.memory_space<vmem>>, vector<1x8x32xf32>
    %1 = vector.shape_cast %0 : vector<1x8x32xf32> to vector<8x32xf32>
    %c0_2 = arith.constant 0 : index
    %c0_3 = arith.constant 0 : index
    %2 = vector.load %arg2[%c0_2, %c0_3] : memref<32x96xf32, #tpu.memory_space<vmem>>, vector<32x96xf32>
    %cst = arith.constant dense<0.000000e+00> : vector<8x96xf32>
    %3 = tpu.matmul %1, %2, %cst {dimension_numbers = #tpu.dot_dimension_numbers<[1], [0], [0], [1], [0, 0, 1, 1], [], []>} : vector<8x32xf32>, vector<32x96xf32>, vector<8x96xf32> -> vector<8x96xf32>
    %c0_4 = arith.constant 0 : index
    %c0_5 = arith.constant 0 : index
    %4 = vector.load %arg3[%c0_4, %c0_5] : memref<1x96xf32, #tpu.memory_space<vmem>>, vector<1x96xf32>
    %5 = vector.broadcast %4 : vector<1x96xf32> to vector<8x96xf32>
    %6 = arith.addf %3, %5 : vector<8x96xf32>
    %7 = vector.extract_strided_slice %6 {offsets = [0, 0], sizes = [8, 8], strides = [1, 1]} : vector<8x96xf32> to vector<8x8xf32>
    %8 = vector.extract_strided_slice %6 {offsets = [0, 32], sizes = [8, 8], strides = [1, 1]} : vector<8x96xf32> to vector<8x8xf32>
    %9 = tpu.transpose %8, [1, 0] : vector<8x8xf32> -> vector<8x8xf32>
    %cst_6 = arith.constant dense<0.000000e+00> : vector<8x8xf32>
    %10 = tpu.matmul %7, %9, %cst_6 {dimension_numbers = #tpu.dot_dimension_numbers<[1], [0], [0], [1], [0, 0, 1, 1], [], []>} : vector<8x8xf32>, vector<8x8xf32>, vector<8x8xf32> -> vector<8x8xf32>
    %11 = vector.extract_strided_slice %6 {offsets = [0, 8], sizes = [8, 8], strides = [1, 1]} : vector<8x96xf32> to vector<8x8xf32>
    %12 = vector.extract_strided_slice %6 {offsets = [0, 40], sizes = [8, 8], strides = [1, 1]} : vector<8x96xf32> to vector<8x8xf32>
    %13 = tpu.transpose %12, [1, 0] : vector<8x8xf32> -> vector<8x8xf32>
    %cst_7 = arith.constant dense<0.000000e+00> : vector<8x8xf32>
    %14 = tpu.matmul %11, %13, %cst_7 {dimension_numbers = #tpu.dot_dimension_numbers<[1], [0], [0], [1], [0, 0, 1, 1], [], []>} : vector<8x8xf32>, vector<8x8xf32>, vector<8x8xf32> -> vector<8x8xf32>
    %15 = vector.extract_strided_slice %6 {offsets = [0, 16], sizes = [8, 8], strides = [1, 1]} : vector<8x96xf32> to vector<8x8xf32>
    %16 = vector.extract_strided_slice %6 {offsets = [0, 48], sizes = [8, 8], strides = [1, 1]} : vector<8x96xf32> to vector<8x8xf32>
    %17 = tpu.transpose %16, [1, 0] : vector<8x8xf32> -> vector<8x8xf32>
    %cst_8 = arith.constant dense<0.000000e+00> : vector<8x8xf32>
    %18 = tpu.matmul %15, %17, %cst_8 {dimension_numbers = #tpu.dot_dimension_numbers<[1], [0], [0], [1], [0, 0, 1, 1], [], []>} : vector<8x8xf32>, vector<8x8xf32>, vector<8x8xf32> -> vector<8x8xf32>
    %19 = vector.extract_strided_slice %6 {offsets = [0, 24], sizes = [8, 8], strides = [1, 1]} : vector<8x96xf32> to vector<8x8xf32>
    %20 = vector.extract_strided_slice %6 {offsets = [0, 56], sizes = [8, 8], strides = [1, 1]} : vector<8x96xf32> to vector<8x8xf32>
    %21 = tpu.transpose %20, [1, 0] : vector<8x8xf32> -> vector<8x8xf32>
    %cst_9 = arith.constant dense<0.000000e+00> : vector<8x8xf32>
    %22 = tpu.matmul %19, %21, %cst_9 {dimension_numbers = #tpu.dot_dimension_numbers<[1], [0], [0], [1], [0, 0, 1, 1], [], []>} : vector<8x8xf32>, vector<8x8xf32>, vector<8x8xf32> -> vector<8x8xf32>
    %23 = tpu.concatenate %10, %14, %18, %22 in 0 : vector<8x8xf32>, vector<8x8xf32>, vector<8x8xf32>, vector<8x8xf32> -> vector<32x8xf32>
    %cst_10 = arith.constant 0.353553385 : f32
    %24 = vector.broadcast %cst_10 : f32 to vector<32x8xf32>
    %25 = arith.mulf %23, %24 : vector<32x8xf32>
    %26 = vector.extract_strided_slice %25 {offsets = [0, 0], sizes = [32, 1], strides = [1, 1]} : vector<32x8xf32> to vector<32x1xf32>
    %cst_11 = arith.constant 1.000000e+00 : f32
    %27 = vector.broadcast %cst_11 : f32 to vector<32x1xf32>
    %28 = arith.subf %26, %27 : vector<32x1xf32>
    %29 = vector.broadcast %28 : vector<32x1xf32> to vector<32x8xf32>
    %30 = arith.subf %25, %29 : vector<32x8xf32>
    %cst_12 = arith.constant 3.000000e+00 : f32
    %31 = vector.broadcast %cst_12 : f32 to vector<32x8xf32>
    %32 = arith.minimumf %30, %31 : vector<32x8xf32>
    %c0_13 = arith.constant 0 : index
    %c0_14 = arith.constant 0 : index
    %33 = vector.load %arg6[%c0_13, %c0_14] : memref<3x33xf32, #tpu.memory_space<vmem>>, vector<1x33xf32>
    %c1 = arith.constant 1 : index
    %c0_15 = arith.constant 0 : index
    %34 = vector.load %arg6[%c1, %c0_15] : memref<3x33xf32, #tpu.memory_space<vmem>>, vector<1x33xf32>
    %c2 = arith.constant 2 : index
    %c0_16 = arith.constant 0 : index
    %35 = vector.load %arg6[%c2, %c0_16] : memref<3x33xf32, #tpu.memory_space<vmem>>, vector<1x33xf32>
    %c0_17 = arith.constant 0 : index
    %c0_18 = arith.constant 0 : index
    %36 = vector.load %arg7[%c0_17, %c0_18] : memref<3x65xf32, #tpu.memory_space<vmem>>, vector<1x65xf32>
    %c1_19 = arith.constant 1 : index
    %c0_20 = arith.constant 0 : index
    %37 = vector.load %arg7[%c1_19, %c0_20] : memref<3x65xf32, #tpu.memory_space<vmem>>, vector<1x65xf32>
    %c2_21 = arith.constant 2 : index
    %c0_22 = arith.constant 0 : index
    %38 = vector.load %arg7[%c2_21, %c0_22] : memref<3x65xf32, #tpu.memory_space<vmem>>, vector<1x65xf32>
    %cst_23 = arith.constant -2.000000e+01 : f32
    %39 = vector.broadcast %cst_23 : f32 to vector<32x8xf32>
    %40 = arith.cmpf ogt, %32, %39 : vector<32x8xf32>
    %41 = vector.shape_cast %32 : vector<32x8xf32> to vector<32x8x1xf32>
    %42 = vector.shape_cast %33 : vector<1x33xf32> to vector<1x1x33xf32>
    %43 = vector.broadcast %41 : vector<32x8x1xf32> to vector<32x8x33xf32>
    %44 = vector.broadcast %42 : vector<1x1x33xf32> to vector<32x8x33xf32>
    %45 = arith.mulf %43, %44 : vector<32x8x33xf32>
    %46 = vector.shape_cast %34 : vector<1x33xf32> to vector<1x1x33xf32>
    %47 = vector.broadcast %46 : vector<1x1x33xf32> to vector<32x8x33xf32>
    %48 = arith.addf %45, %47 : vector<32x8x33xf32>
    %cst_24 = arith.constant 0.000000e+00 : f32
    %49 = vector.broadcast %cst_24 : f32 to vector<32x8x33xf32>
    %50 = arith.maximumf %48, %49 : vector<32x8x33xf32>
    %51 = vector.shape_cast %35 : vector<1x33xf32> to vector<1x1x33xf32>
    %52 = vector.broadcast %51 : vector<1x1x33xf32> to vector<32x8x33xf32>
    %53 = arith.mulf %50, %52 : vector<32x8x33xf32>
    %cst_25 = arith.constant dense<0.000000e+00> : vector<32x8xf32>
    %54 = vector.multi_reduction <add>, %53, %cst_25 [2] : vector<32x8x33xf32> to vector<32x8xf32>
    %cst_26 = arith.constant 0.000000e+00 : f32
    %55 = vector.broadcast %cst_26 : f32 to vector<32x8xf32>
    %56 = arith.select %40, %54, %55 : vector<32x8xi1>, vector<32x8xf32>
    %cst_27 = arith.constant dense<0.000000e+00> : vector<32xf32>
    %57 = vector.multi_reduction <add>, %56, %cst_27 [1] : vector<32x8xf32> to vector<32xf32>
    %58 = vector.shape_cast %57 : vector<32xf32> to vector<32x1xf32>
    %59 = vector.shape_cast %58 : vector<32x1xf32> to vector<32x1x1xf32>
    %60 = vector.shape_cast %36 : vector<1x65xf32> to vector<1x1x65xf32>
    %61 = vector.broadcast %59 : vector<32x1x1xf32> to vector<32x1x65xf32>
    %62 = vector.broadcast %60 : vector<1x1x65xf32> to vector<32x1x65xf32>
    %63 = arith.mulf %61, %62 : vector<32x1x65xf32>
    %64 = vector.shape_cast %37 : vector<1x65xf32> to vector<1x1x65xf32>
    %65 = vector.broadcast %64 : vector<1x1x65xf32> to vector<32x1x65xf32>
    %66 = arith.addf %63, %65 : vector<32x1x65xf32>
    %cst_28 = arith.constant 0.000000e+00 : f32
    %67 = vector.broadcast %cst_28 : f32 to vector<32x1x65xf32>
    %68 = arith.maximumf %66, %67 : vector<32x1x65xf32>
    %69 = vector.shape_cast %38 : vector<1x65xf32> to vector<1x1x65xf32>
    %70 = vector.broadcast %69 : vector<1x1x65xf32> to vector<32x1x65xf32>
    %71 = arith.mulf %68, %70 : vector<32x1x65xf32>
    %cst_29 = arith.constant dense<0.000000e+00> : vector<32x1xf32>
    %72 = vector.multi_reduction <add>, %71, %cst_29 [2] : vector<32x1x65xf32> to vector<32x1xf32>
    %73 = vector.broadcast %72 : vector<32x1xf32> to vector<32x8xf32>
    %74 = arith.mulf %56, %73 : vector<32x8xf32>
    %cst_30 = arith.constant dense<0.000000e+00> : vector<32xf32>
    %75 = vector.multi_reduction <add>, %74, %cst_30 [1] : vector<32x8xf32> to vector<32xf32>
    %76 = vector.shape_cast %75 : vector<32xf32> to vector<32x1xf32>
    %77 = vector.shape_cast %76 : vector<32x1xf32> to vector<32x1x1xf32>
    %78 = vector.shape_cast %36 : vector<1x65xf32> to vector<1x1x65xf32>
    %79 = vector.broadcast %77 : vector<32x1x1xf32> to vector<32x1x65xf32>
    %80 = vector.broadcast %78 : vector<1x1x65xf32> to vector<32x1x65xf32>
    %81 = arith.mulf %79, %80 : vector<32x1x65xf32>
    %82 = vector.shape_cast %37 : vector<1x65xf32> to vector<1x1x65xf32>
    %83 = vector.broadcast %82 : vector<1x1x65xf32> to vector<32x1x65xf32>
    %84 = arith.addf %81, %83 : vector<32x1x65xf32>
    %cst_31 = arith.constant 0.000000e+00 : f32
    %85 = vector.broadcast %cst_31 : f32 to vector<32x1x65xf32>
    %86 = arith.maximumf %84, %85 : vector<32x1x65xf32>
    %87 = vector.shape_cast %38 : vector<1x65xf32> to vector<1x1x65xf32>
    %88 = vector.broadcast %87 : vector<1x1x65xf32> to vector<32x1x65xf32>
    %89 = arith.mulf %86, %88 : vector<32x1x65xf32>
    %cst_32 = arith.constant dense<0.000000e+00> : vector<32x1xf32>
    %90 = vector.multi_reduction <add>, %89, %cst_32 [2] : vector<32x1x65xf32> to vector<32x1xf32>
    %cst_33 = arith.constant 1.500000e+00 : f32
    %91 = vector.broadcast %cst_33 : f32 to vector<32x1xf32>
    %92 = arith.cmpf ogt, %76, %91 : vector<32x1xf32>
    %93 = vector.broadcast %90 : vector<32x1xf32> to vector<32x8xf32>
    %94 = arith.mulf %74, %93 : vector<32x8xf32>
    %95 = vector.shape_cast %92 : vector<32x1xi1> to vector<32x1xi1>
    %96 = vector.broadcast %95 : vector<32x1xi1> to vector<32x8xi1>
    %97 = arith.select %96, %94, %74 : vector<32x8xi1>, vector<32x8xf32>
    %cst_34 = arith.constant 0.000000e+00 : f32
    %98 = vector.broadcast %cst_34 : f32 to vector<32x8xf32>
    %99 = arith.maximumf %97, %98 : vector<32x8xf32>
    %c0_35 = arith.constant 0 : index
    %c0_36 = arith.constant 0 : index
    %100 = vector.load %arg4[%c0_35, %c0_36] : memref<32x32xf32, #tpu.memory_space<vmem>>, vector<32x32xf32>
    %cst_37 = arith.constant 0.000000e+00 : f32
    %101 = vector.broadcast %cst_37 : f32 to vector<8x32xf32>
    %102 = vector.extract_strided_slice %99 {offsets = [0, 0], sizes = [8, 8], strides = [1, 1]} : vector<32x8xf32> to vector<8x8xf32>
    %103 = vector.extract_strided_slice %6 {offsets = [0, 64], sizes = [8, 8], strides = [1, 1]} : vector<8x96xf32> to vector<8x8xf32>
    %cst_38 = arith.constant dense<0.000000e+00> : vector<8x8xf32>
    %104 = tpu.matmul %102, %103, %cst_38 {dimension_numbers = #tpu.dot_dimension_numbers<[1], [0], [0], [1], [0, 0, 1, 1], [], []>} : vector<8x8xf32>, vector<8x8xf32>, vector<8x8xf32> -> vector<8x8xf32>
    %105 = vector.extract_strided_slice %100 {offsets = [0, 0], sizes = [8, 32], strides = [1, 1]} : vector<32x32xf32> to vector<8x32xf32>
    %cst_39 = arith.constant dense<0.000000e+00> : vector<8x32xf32>
    %106 = tpu.matmul %104, %105, %cst_39 {dimension_numbers = #tpu.dot_dimension_numbers<[1], [0], [0], [1], [0, 0, 1, 1], [], []>} : vector<8x8xf32>, vector<8x32xf32>, vector<8x32xf32> -> vector<8x32xf32>
    %107 = arith.addf %101, %106 : vector<8x32xf32>
    %108 = vector.extract_strided_slice %99 {offsets = [8, 0], sizes = [8, 8], strides = [1, 1]} : vector<32x8xf32> to vector<8x8xf32>
    %109 = vector.extract_strided_slice %6 {offsets = [0, 72], sizes = [8, 8], strides = [1, 1]} : vector<8x96xf32> to vector<8x8xf32>
    %cst_40 = arith.constant dense<0.000000e+00> : vector<8x8xf32>
    %110 = tpu.matmul %108, %109, %cst_40 {dimension_numbers = #tpu.dot_dimension_numbers<[1], [0], [0], [1], [0, 0, 1, 1], [], []>} : vector<8x8xf32>, vector<8x8xf32>, vector<8x8xf32> -> vector<8x8xf32>
    %111 = vector.extract_strided_slice %100 {offsets = [8, 0], sizes = [8, 32], strides = [1, 1]} : vector<32x32xf32> to vector<8x32xf32>
    %cst_41 = arith.constant dense<0.000000e+00> : vector<8x32xf32>
    %112 = tpu.matmul %110, %111, %cst_41 {dimension_numbers = #tpu.dot_dimension_numbers<[1], [0], [0], [1], [0, 0, 1, 1], [], []>} : vector<8x8xf32>, vector<8x32xf32>, vector<8x32xf32> -> vector<8x32xf32>
    %113 = arith.addf %107, %112 : vector<8x32xf32>
    %114 = vector.extract_strided_slice %99 {offsets = [16, 0], sizes = [8, 8], strides = [1, 1]} : vector<32x8xf32> to vector<8x8xf32>
    %115 = vector.extract_strided_slice %6 {offsets = [0, 80], sizes = [8, 8], strides = [1, 1]} : vector<8x96xf32> to vector<8x8xf32>
    %cst_42 = arith.constant dense<0.000000e+00> : vector<8x8xf32>
    %116 = tpu.matmul %114, %115, %cst_42 {dimension_numbers = #tpu.dot_dimension_numbers<[1], [0], [0], [1], [0, 0, 1, 1], [], []>} : vector<8x8xf32>, vector<8x8xf32>, vector<8x8xf32> -> vector<8x8xf32>
    %117 = vector.extract_strided_slice %100 {offsets = [16, 0], sizes = [8, 32], strides = [1, 1]} : vector<32x32xf32> to vector<8x32xf32>
    %cst_43 = arith.constant dense<0.000000e+00> : vector<8x32xf32>
    %118 = tpu.matmul %116, %117, %cst_43 {dimension_numbers = #tpu.dot_dimension_numbers<[1], [0], [0], [1], [0, 0, 1, 1], [], []>} : vector<8x8xf32>, vector<8x32xf32>, vector<8x32xf32> -> vector<8x32xf32>
    %119 = arith.addf %113, %118 : vector<8x32xf32>
    %120 = vector.extract_strided_slice %99 {offsets = [24, 0], sizes = [8, 8], strides = [1, 1]} : vector<32x8xf32> to vector<8x8xf32>
    %121 = vector.extract_strided_slice %6 {offsets = [0, 88], sizes = [8, 8], strides = [1, 1]} : vector<8x96xf32> to vector<8x8xf32>
    %cst_44 = arith.constant dense<0.000000e+00> : vector<8x8xf32>
    %122 = tpu.matmul %120, %121, %cst_44 {dimension_numbers = #tpu.dot_dimension_numbers<[1], [0], [0], [1], [0, 0, 1, 1], [], []>} : vector<8x8xf32>, vector<8x8xf32>, vector<8x8xf32> -> vector<8x8xf32>
    %123 = vector.extract_strided_slice %100 {offsets = [24, 0], sizes = [8, 32], strides = [1, 1]} : vector<32x32xf32> to vector<8x32xf32>
    %cst_45 = arith.constant dense<0.000000e+00> : vector<8x32xf32>
    %124 = tpu.matmul %122, %123, %cst_45 {dimension_numbers = #tpu.dot_dimension_numbers<[1], [0], [0], [1], [0, 0, 1, 1], [], []>} : vector<8x8xf32>, vector<8x32xf32>, vector<8x32xf32> -> vector<8x32xf32>
    %125 = arith.addf %119, %124 : vector<8x32xf32>
    %c0_46 = arith.constant 0 : index
    %c0_47 = arith.constant 0 : index
    %126 = vector.load %arg5[%c0_46, %c0_47] : memref<1x32xf32, #tpu.memory_space<vmem>>, vector<1x32xf32>
    %127 = vector.broadcast %126 : vector<1x32xf32> to vector<8x32xf32>
    %128 = arith.addf %125, %127 : vector<8x32xf32>
    %c0_48 = arith.constant 0 : index
    %c0_49 = arith.constant 0 : index
    %c0_50 = arith.constant 0 : index
    %129 = vector.load %arg8[%c0_48, %c0_49, %c0_50] : memref<1x8x32xf32, #tpu.memory_space<vmem>>, vector<1x8x32xf32>
    %130 = vector.shape_cast %129 : vector<1x8x32xf32> to vector<8x32xf32>
    %131 = vector.shape_cast %128 : vector<8x32xf32> to vector<1x8x32xf32>
    tpu.vector_store %arg8[%c0_48, %c0_49, %c0_50], %131 {strides = array<i32>} : memref<1x8x32xf32, #tpu.memory_space<vmem>>, vector<1x8x32xf32>,
    return
  }
  func.func @transform_0(%arg0: i32) -> (i32, i32, i32) {
    %c0_i32 = arith.constant 0 : i32
    %c0_i32_0 = arith.constant 0 : i32
    %c0_i32_1 = arith.constant 0 : i32
    return %arg0, %c0_i32, %c0_i32_0 : i32, i32, i32
  }
  func.func @transform_1(%arg0: i32) -> (i32, i32) {
    %c0_i32 = arith.constant 0 : i32
    %c0_i32_0 = arith.constant 0 : i32
    %c0_i32_1 = arith.constant 0 : i32
    return %c0_i32, %c0_i32_0 : i32, i32
  }
  func.func @transform_2(%arg0: i32) -> (i32, i32) {
    %c0_i32 = arith.constant 0 : i32
    %c0_i32_0 = arith.constant 0 : i32
    %c0_i32_1 = arith.constant 0 : i32
    return %c0_i32, %c0_i32_0 : i32, i32
  }
  func.func @transform_3(%arg0: i32) -> (i32, i32) {
    %c0_i32 = arith.constant 0 : i32
    %c0_i32_0 = arith.constant 0 : i32
    %c0_i32_1 = arith.constant 0 : i32
    return %c0_i32, %c0_i32_0 : i32, i32
  }
  func.func @transform_4(%arg0: i32) -> (i32, i32) {
    %c0_i32 = arith.constant 0 : i32
    %c0_i32_0 = arith.constant 0 : i32
    %c0_i32_1 = arith.constant 0 : i32
    return %c0_i32, %c0_i32_0 : i32, i32
  }
  func.func @transform_5(%arg0: i32) -> (i32, i32) {
    %c0_i32 = arith.constant 0 : i32
    %c0_i32_0 = arith.constant 0 : i32
    %c0_i32_1 = arith.constant 0 : i32
    return %c0_i32, %c0_i32_0 : i32, i32
  }
  func.func @transform_6(%arg0: i32) -> (i32, i32) {
    %c0_i32 = arith.constant 0 : i32
    %c0_i32_0 = arith.constant 0 : i32
    %c0_i32_1 = arith.constant 0 : i32
    return %c0_i32, %c0_i32_0 : i32, i32
  }
  func.func @transform_7(%arg0: i32) -> (i32, i32, i32) {
    %c0_i32 = arith.constant 0 : i32
    %c0_i32_0 = arith.constant 0 : i32
    %c0_i32_1 = arith.constant 0 : i32
    return %arg0, %c0_i32, %c0_i32_0 : i32, i32, i32
  }
}

</mosaic_0001>

<bundles_post_ra>
// kernel: tpu_custom_call.1
= control target key start
LH: loop header
LB: loop body
LE: loop exit
PB: predicated region body
PF: predicated region fallthrough
CT: control target
= control target key end

     0   :  { %12 = vsyncpa [#allocation3], 0  ;;  %s5032_s0 = inlined_call_operand.hbm [shape: f32[2,8,32], index: 0, kind: input, shape index: {}]   ;;  %s5033_s1 = inlined_call_operand.hbm [shape: f32[32,96], index: 1, kind: input, shape index: {}]   ;;  %s5034_s2 = inlined_call_operand.vmem [shape: f32[1,96], index: 2, kind: input, shape index: {}]   ;;  %s5035_s3 = inlined_call_operand.hbm [shape: f32[32,32], index: 3, kind: input, shape index: {}]   ;;  %s5036_s4 = inlined_call_operand.vmem [shape: f32[1,32], index: 4, kind: input, shape index: {}]   ;;  %s5037_s5 = inlined_call_operand.vmem [shape: f32[3,33], index: 5, kind: input, shape index: {}]   ;;  %s5038_s6 = inlined_call_operand.vmem [shape: f32[3,65], index: 6, kind: input, shape index: {}]   ;;  %s5039_s7 = inlined_call_operand.hbm [shape: f32[2,8,32], index: 7, kind: output, shape index: {}]  }
   0x1   :  { %14 = vsyncpa [#allocation3 + $0x1], 0 }
   0x2   :  { %15 = vsyncpa [#allocation6], 0 }
   0x3   :  { %16 = vsyncpa [#allocation4], 0 }
   0x4   :  { %18 = vsyncpa [#allocation4 + $0x1], 0  ;;  %s3816_s24 = smov 0   ;;  %s3818_s25 = smov 0  }
   0x5   :  { %s3820_s26 = smov 0   ;;  %s3822_s27 = smov 0  }
   0x6 LB: > { %s3837_s28 = sadd.s32 4294967295, %s3753_s27   ;;  %s3360_s29 = sadd.s32 4294967294, %s3753_s27   ;;  %s3753_s27 = sphi %s3822_s27, %s5059_s27   ;;  %s3749_s26 = sphi %s3820_s26, %s5058_s26   ;;  %s3745_s25 = sphi %s3818_s25, %s5057_s25   ;;  %s3741_s24 = sphi %s3816_s24, %s5056_s24  }
   0x7   : > { %p44_p0 = scmp.ne.s32.totalorder %s3745_s25, %s3741_s24  ;;  %p5040_p1 = scmp.eq.s32.totalorder %s3837_s28, 0 }
   0x8   : > { %p200_p3 = scmp.eq.s32.totalorder %s3360_s29, 1  ;;  %p3361_p5 = scmp.ge.s32.totalorder %s3753_s27, 1 }
   0x9   : > { %p3846_p4 = por %p5040_p1, %p44_p0  ;;  %p207_p7 = scmp.lt.s32.totalorder %s3753_s27, 3 }
   0xa   : > { %p3851_p6 = por %p200_p3, %p44_p0  ;;  %s3755_s10 = smov [#allocation5]  }
   0xb   : > { %s5043_s30 = scalar_select %p3846_p4, 1, 0 }
   0xc   : > { %s5044_s8 = scalar_select %p3851_p6, 1, 0 }
   0xd   : > { %p3856_p8 = pnand %p3361_p5, %p207_p7  ;;  %s219_s11 = sshll.u32 %s3755_s10, 4  ;;  %s3860_s11 = int_to_ptr.vmem [resolvable:$true] %s219_s11 }
   0xe   : > { %s3756_s13 = smov [#allocation7]   ;;  %s3597_s17 = scalar_lea.hbm %s5033_s1, 512 }
   0xf   : > { %p3520_p9 = pneg %p3856_p8  ;;  %s235_s14 = sshll.u32 %s3756_s13, 4  ;;  %s3871_s14 = int_to_ptr.vmem [resolvable:$true] %s235_s14 }
  0x10   : > { %p3598_p12 = scmp.ne.s32.totalorder %s5033_s1, %s3597_s17  ;;  %p3604_p5 = scmp.lt.u32.totalorder %s3597_s17, %s5033_s1 }
  0x11   : > { %p3867_p11 = pnand %p3520_p9, %p5040_p1 }
  0x13   : > { %p3599_p13 = pneg %p3867_p11 }
  0x15   : > { %p3600_p0 = pnand %p3599_p13, %p3598_p12 }
  0x17   : > { %p3601_p3 = pneg %p3600_p0 }
  0x19   : > { %p3606_p7 = pnand %p3604_p5, %p3601_p3 }
  0x1b   : > { %3609 = shalt.err (!%p3606_p7)
}
  0x1c   : > { %s3610_s22 = scalar_lea.vmem %s3860_s11, 512  ;;  %p3618_p2 = scmp.lt.s32.totalorder %s3860_s11, %s3860_s11 }
  0x1d   : > { %p3611_p9 = scmp.ne.s32.totalorder %s3860_s11, %s3610_s22  ;;  %p3619_p12 = scmp.lt.s32.totalorder %s3610_s22, %s3610_s22 }
  0x1f   : > { %p3613_p10 = pnand %p3611_p9, %p3599_p13  ;;  %p3620_p0 = por %p3619_p12, %p3618_p2 }
  0x21   : > { %p3614_p1 = pneg %p3613_p10 }
  0x23   : > { %p3621_p6 = pnand %p3620_p0, %p3614_p1 }
  0x25   : > { %3624 = shalt.err (!%p3621_p6)
}
  0x26   : > { %s3757_s23 = smov 128   ;;  %s3758_s29 = smov 8  }
  0x27   : > { %3523 = dma.hbm_to_vmem [thread:$0]  (!%p3867_p11), %s5033_s1, 512, %s3860_s11, [#allocation6], %s3757_s23, %s3757_s23, %s3758_s29  }
  0x28   : > { %s3625_s17 = scalar_lea.hbm %s5035_s3, 512 }
  0x29   : > { %p3626_p2 = scmp.ne.s32.totalorder %s5035_s3, %s3625_s17  ;;  %p3632_p10 = scmp.lt.u32.totalorder %s3625_s17, %s5035_s3 }
  0x2b   : > { %p3628_p1 = pnand %p3626_p2, %p3599_p13 }
  0x2d   : > { %p3629_p6 = pneg %p3628_p1 }
  0x2f   : > { %p3634_p3 = pnand %p3632_p10, %p3629_p6 }
  0x31   : > { %3637 = shalt.err (!%p3634_p3)
}
  0x32   : > { %s3638_s11 = scalar_lea.vmem %s3871_s14, 512  ;;  %p3646_p12 = scmp.lt.s32.totalorder %s3871_s14, %s3871_s14 }
  0x33   : > { %p3639_p5 = scmp.ne.s32.totalorder %s3871_s14, %s3638_s11  ;;  %p3647_p0 = scmp.lt.s32.totalorder %s3638_s11, %s3638_s11 }
  0x35   : > { %p3641_p7 = pnand %p3639_p5, %p3599_p13  ;;  %p3648_p2 = por %p3647_p0, %p3646_p12 }
  0x37   : > { %p3642_p9 = pneg %p3641_p7 }
  0x39   : > { %p3649_p1 = pnand %p3648_p2, %p3642_p9 }
  0x3b   : > { %3652 = shalt.err (!%p3649_p1)
}
  0x3c   : > { %3526 = dma.hbm_to_vmem [thread:$0]  (!%p3867_p11), %s5035_s3, 512, %s3871_s14, [#allocation6], %s3757_s23, %s3757_s23, %s3758_s29  }
  0x3d   : > { %s3926_s13 = sadd.s32 1, %s3753_s27   ;;  %s31_s12 = sadd.s32 1, %s3749_s26 }
  0x3e   : > { %s28_s15 = ssub.s32 %s3753_s27, %s3926_s13  ;;  %p38_p13 = scmp.ne.s32.totalorder %s3749_s26, %s3745_s25 }
  0x3f   : > { %p29_p6 = scmp.eq.s32.totalorder %s28_s15, 0  ;;  %p39_p10 = scmp.eq.s32.totalorder %s3753_s27, 0 }
  0x40   : > { %p5047_p3 = scmp.eq.s32.totalorder %s3837_s28, 1  ;;  %p3537_p7 = scmp.lt.s32.totalorder %s3753_s27, 2 }
  0x41   : > { %s3942_s17 = scalar_select %p29_p6, %s3749_s26, %s31_s12  }
  0x42   : > { %p3936_p5 = por %p5047_p3, %p38_p13  ;;  %p40_p9 = por %p39_p10, %p38_p13 }
  0x43   : > { %s258_s18 = sand.u32 1, %s3749_s26   ;;  %s3366_s14 = sshll.u32 %s3753_s27, 7 }
  0x44   : > { %s5048_s16 = scalar_select %p3936_p5, 1, 0 }
  0x45   : > { %s3365_s19 = sshll.u32 %s258_s18, 3  ;;  %s3949_s20 = scalar_lea.hbm %s5032_s0, %s3366_s14 }
  0x46   : > { %s262_s21 = scalar_lea.vmem [#allocation2], %s3365_s19  ;;  %p3953_p11 = pnand %p3537_p7, %p40_p9 }
  0x47   : > { %s269_s11 = sshll.u32 %s262_s21, 4  ;;  %s259_s10 = scalar_lea.sflag [#allocation3], %s258_s18  ;;  %s3951_s11 = int_to_ptr.vmem [resolvable:$true] %s269_s11 }
  0x48   : > { %s3653_s12 = scalar_lea.hbm %s3949_s20, 128  ;;  %p3655_p0 = pneg %p3953_p11 }
  0x49   : > { %p3654_p12 = scmp.ne.s32.totalorder %s3949_s20, %s3653_s12  ;;  %s3658_s14 = scalar_lea.hbm %s5032_s0, 256 }
  0x4a   : > { %p3659_p13 = scmp.lt.u32.totalorder %s3949_s20, %s5032_s0  ;;  %p3660_p6 = scmp.lt.u32.totalorder %s3658_s14, %s3653_s12 }
  0x4b   : > { %p3656_p2 = pnand %p3655_p0, %p3654_p12  ;;  %p3662_p3 = scmp.lt.u32.totalorder %s3653_s12, %s3949_s20 }
  0x4c   : > { %p3661_p10 = por %p3660_p6, %p3659_p13 }
  0x4d   : > { %p3657_p1 = pneg %p3656_p2 }
  0x4e   : > { %p3663_p7 = por %p3662_p3, %p3661_p10 }
  0x50   : > { %p3664_p9 = pnand %p3663_p7, %p3657_p1 }
  0x52   : > { %3667 = shalt.err (!%p3664_p9)
}
  0x53   : > { %s3668_s18 = scalar_lea.vmem %s3951_s11, 128  ;;  %s3759_s21 = smov [#allocation2]  }
  0x54   : > { %p3669_p12 = scmp.ne.s32.totalorder %s3951_s11, %s3668_s18  ;;  %s3673_s15 = sshll.u32 %s3759_s21, 4  ;;  %s3674_s15 = int_to_ptr.vmem [resolvable:$false] %s3673_s15 }
  0x55   : > { %s3675_s19 = scalar_lea.vmem %s3674_s15, 256  ;;  %p3676_p4 = scmp.lt.s32.totalorder %s3951_s11, %s3674_s15 }
  0x56   : > { %p3671_p2 = pnand %p3669_p12, %p3655_p0  ;;  %p3677_p13 = scmp.lt.s32.totalorder %s3675_s19, %s3668_s18 }
  0x58   : > { %p3672_p5 = pneg %p3671_p2  ;;  %p3678_p6 = por %p3677_p13, %p3676_p4 }
  0x5a   : > { %p3679_p10 = pnand %p3678_p6, %p3672_p5 }
  0x5c   : > { %3682 = shalt.err (!%p3679_p10)
}
  0x5d   : > { %3530 = dma.hbm_to_vmem [thread:$0]  (!%p3953_p11), %s3949_s20, 128, %s3951_s11, %s259_s10  }
  0x5e   : > { %278 = sbr.rel (%p3856_p8) target bundleno = 2649 (0xa59), region = 48  ;;  %s3985_s12 = sand.u32 (!%p3856_p8), 1, %s3745_s25  }
  0x5f   : > { %s3368_s14 = sshll.u32 (!%p3856_p8), %s3985_s12, 3  ;;  %s281_s23 = scalar_lea.sflag (!%p3856_p8), [#allocation3], %s3985_s12 }
  0x60   : > { %s284_s29 = scalar_lea.vmem (!%p3856_p8), [#allocation2], %s3368_s14  ;;  %p5050_p4 = scmp.ne.s32.totalorder (!%p3856_p8), %s5043_s30, 0 }
  0x65   : > { %3728 = dma.done.wait (%p5050_p4), %s281_s23, 128  }
  0x66   : > { %3730 = vsyncadd (%p5050_p4), %s281_s23, 4294967168  ;;  %p5051_p5 = scmp.eq.s32.totalorder %s3837_s28, 0 }
  0x68   : > { %3732 = dma.done.wait (%p5051_p5), [#allocation6], 1024   ;;  %p5052_p8 = pmov %p5051_p5 }
  0x69   : > { %v3760_v0 = vmov 0.0|0.0   ;;  %vm3761_vm0 = vmmov 0   ;;  %v3762_v1 = vmov 0.0   ;;  %v324_v2 = vld [vmem:[#allocation5] sm:$0xff]  ;;  %v325_v3 = vld [vmem:[#allocation5 + $0x8] sm:$0xff]  ;;  %v326_v4 = vld [vmem:[#allocation5 + $0x10] sm:$0xff]  ;;  %v767_v30 = vlaneseq }
  0x6a   : > { %3734 = vsyncadd (%p5052_p8), [#allocation6], 4294966272  ;;  %3502 = vmatprep.subr.bf16.mxu0 %v3760_v0  ;;  %3439 = vmatprep.mubr.msk.f32.mxu0 %vm3761_vm0, %v3762_v1  ;;  %v3503_v5 = vpack.c.bf16 %v325_v3, %v324_v2  ;;  %v327_v6 = vld [vmem:[#allocation5 + $0x18] sm:$0xff]  ;;  %vm335_vm1 = vcmask 261120   ;;  %v3372_v9 = vld [vmem:[%s5034_s2] ss:$0 sm:$0xff] }
  0x6b   : > { %3442 = vmatprep.subr.mxu1 %v3762_v1  ;;  %3444 = vmatprep.mubr.msk.f32.mxu1 %vm3761_vm0, %v3762_v1  ;;  %v3506_v7 = vpack.c.bf16 %v327_v6, %v326_v4  ;;  %v323_v8 = vld [vmem:[%s284_s29] sm:$0xff]  ;;  %s3763_s20 = smov 120   ;;  %s3764_s11 = smov 96   ;;  %vm412_vm2 = vcmask 64512   ;;  %v3770_v20 = vmov 0   ;;  %v768_v32 = vshrl.u32 %v767_v30, 7 }
  0x6c   : > { %3504 = vmatpush3.bf16.msra.mxu0 %v3503_v5  ;;  %s3765_s22 = smov 80   ;;  %s3766_s10 = smov 88   ;;  %3592 = vset.pattern.permute.xlu1 %v3770_v20  ;;  %v1261_v33 = vand.u32 127, %v767_v30  ;;  %v4086_v54 = vld [vmem:[%s5037_s5] ss:$0 sm:$0xff]  ;;  %vm1131_vm3 = vcmask 269312  }
  0x6d   : > { %3505 = vmatprep.subr.bf16.mxu0 %v3760_v0  ;;  %s3767_s18 = smov 72   ;;  %s3768_s21 = smov 112   ;;  %3593 = vset.pattern.permute.xlu0 %v3770_v20  ;;  %v4049_v37 = vsub.s32 0, %v768_v32  ;;  %v4051_v38 = vsub.s32 1, %v768_v32  ;;  %v4059_v42 = vsub.s32 3, %v768_v32  ;;  %v4061_v43 = vsub.s32 2, %v768_v32 }
  0x6e   : > { %s3769_s15 = smov 104   ;;  %v4047_v34 = vsub.s32 %v1261_v33, %v768_v32  ;;  %v4067_v46 = vsub.s32 5, %v768_v32  ;;  %v4069_v47 = vsub.s32 4, %v768_v32  ;;  %v4075_v50 = vsub.s32 7, %v768_v32  ;;  %v4091_v55 = vld [vmem:[%s5037_s5 + $0x1] ss:$0 sm:$0xff] }
  0x6f   : > { %v4077_v51 = vsub.s32 6, %v768_v32  ;;  %v4100_v0 = vld [vmem:[%s5037_s5 + $0x2] ss:$0 sm:$0xff]  ;;  %vm1390_vm4 = vcmask 1041409   ;;  %vm1392_vm5 = vcmask 1042434   ;;  %vm1394_vm6 = vcmask 1043459  }
  0x70   : > { %3507 = vmatpush3.bf16.msra.mxu0 %v3506_v7  ;;  %vm1396_vm7 = vcmask 1044484   ;;  %vm1398_vm8 = vcmask 1045509   ;;  %vm1400_vm9 = vcmask 1046534   ;;  %vm1402_vm10 = vcmask 1047559   ;;  %s3771_s19 = smov 56   ;;  %s322_s23 = scalar_lea.vmem [#allocation8], %s3368_s14 }
  0x71   : > { %3452 = vmatprep.subr.mxu0 %v3762_v1  ;;  %vm1737_vm12 = vcmask 524288   ;;  %s3271_s29 = sshll.u32 %s322_s23, 4  ;;  %p5053_p0 = scmp.ne.s32.totalorder %s5048_s16, 0  ;;  %s4989_s29 = int_to_ptr.vmem [resolvable:$true] %s3271_s29 }
  0x72   : > { %s3775_s14 = smov [#allocation8]  }
  0x73   : > { %3440 = vmatmul.mubr.msk.f32.vlgmr.msra.gmra.mrb[0].mxu0 %vm335_vm1, %v323_v8 }
  0x74   : > { %3454 = vmatprep.mubr.msk.f32.mxu0 %vm3761_vm0, %v3762_v1 }
 0x146   : > { %v405_v10 = vpop.f32.mrb[0].mxu0 }
 0x147   : > { %v4011_v11 = vadd.f32 %v3372_v9, %v405_v10  ;;  %v3441_v12 = vpop.f32.mrb[1].mxu0 }
 0x149   : > { %487 = vrot.lane.b32.xlu1 %v4011_v11, %s3763_s20  ;;  %410 = vrot.lane.b32.xlu0 %v4011_v11, %s3764_s11  ;;  %s3258_s11 = scalar_lea.sflag [#allocation4], %s3985_s12 }
 0x14d   : > { %567 = vrot.lane.b32.xlu1 %v4011_v11, %s3765_s22  ;;  %489 = vrot.lane.b32.xlu0 %v4011_v11, %s3766_s10  ;;  %s3772_s22 = smov 48   ;;  %s3773_s10 = smov 64  }
 0x151   : > { %645 = vrot.lane.b32.xlu1 %v4011_v11, %s3767_s18  ;;  %565 = vrot.lane.b32.xlu0 %v4011_v11, %s3768_s21  ;;  %s3774_s18 = smov 40  }
 0x155   : > { %643 = vrot.lane.b32.xlu0 %v4011_v11, %s3769_s15 }
 0x1bb   : > { %v488_v13 = vpop.permute.xlu1 %487  ;;  %v411_v14 = vpop.permute.xlu0 %410 }
 0x1bc   : > { %3443 = vmatpush3.xpose.msk.msra.mxu1 %vm412_vm2, %v411_v14 }
 0x1bd   : > { %3447 = vmatprep.subr.mxu1 %v3762_v1 }
 0x1bf   : > { %v568_v15 = vpop.permute.xlu1 %567  ;;  %3445 = vmatmul.mubr.msk.f32.vlgmr.msra.gmra.mrb[0].mxu1 %vm412_vm2, %v4011_v11  ;;  %v490_v16 = vpop.permute.xlu0 %489 }
 0x1c0   : > { %3448 = vmatpush3.xpose.msk.msra.mxu1 %vm412_vm2, %v490_v16  ;;  %3453 = vmatpush3.xpose.msk.msra.mxu0 %vm412_vm2, %v568_v15 }
 0x1c1   : > { %3449 = vmatprep.mubr.msk.f32.mxu1 %vm3761_vm0, %v3762_v1  ;;  %3457 = vmatprep.subr.mxu1 %v3762_v1 }
 0x1c2   : > { %3462 = vmatprep.subr.mxu0 %v3762_v1 }
 0x1c3   : > { %v646_v17 = vpop.permute.xlu1 %645  ;;  %3450 = vmatmul.mubr.msk.f32.vlgmr.msra.gmra.mrb[2].mxu1 %vm412_vm2, %v488_v13  ;;  %v566_v18 = vpop.permute.xlu0 %565 }
 0x1c4   : > { %3455 = vmatmul.mubr.msk.f32.vlgmr.msra.gmra.mrb[2].mxu0 %vm412_vm2, %v566_v18  ;;  %3458 = vmatpush3.xpose.msk.msra.mxu1 %vm412_vm2, %v646_v17 }
 0x1c5   : > { %3459 = vmatprep.mubr.msk.f32.mxu1 %vm3761_vm0, %v3762_v1  ;;  %3467 = vmatprep.subr.mxu1 %v3762_v1 }
 0x1c6   : > { %3464 = vmatprep.mubr.msk.f32.mxu0 %vm3761_vm0, %v3762_v1 }
 0x1c7   : > { %v644_v19 = vpop.permute.xlu0 %643 }
 0x1c8   : > { %3460 = vmatmul.mubr.msk.f32.vlgmr.msra.gmra.mrb[4].mxu1 %vm412_vm2, %v644_v19 }
 0x1c9   : > { %3469 = vmatprep.mubr.msk.f32.mxu1 %vm3761_vm0, %v3762_v1 }
 0x292   : > { %v4041_v21 = vpop.f32.mrb[0].mxu1 }
 0x293   : > { %v3446_v22 = vpop.f32.mrb[1].mxu1 }
 0x296   : > { %v561_v23 = vpop.f32.mrb[2].mxu1 }
 0x297   : > { %v722_v24 = vmul.f32 0.35355338, %v561_v23  ;;  %v3451_v25 = vpop.f32.mrb[3].mxu1  ;;  %v4043_v26 = vpop.f32.mrb[2].mxu0 }
 0x298   : > { %v3456_v27 = vpop.f32.mrb[3].mxu0 }
 0x299   : > { %v3383_v28 = vadd.f32 -1.0, %v722_v24 }
 0x29b   : > { %736 = vperm.xlu1 %3592, %v3383_v28   ;;  %v4045_v29 = vpop.f32.mrb[4].mxu1 }
 0x29c   : > { %v3461_v31 = vpop.f32.mrb[5].mxu1 }
 0x31a   : > { %v737_v35 = vpop.permute.xlu1 %736 }
 0x31b   : > { %v750_v36 = vsub.f32 %v722_v24, %v737_v35 }
 0x31d   : > { %v4053_v39 = vmin.f32 %v750_v36, 3.0 }
 0x31f   : > { %v833_v40 = vrot.slane %v4053_v39, %v4051_v38  ;;  %v826_v41 = vrot.slane %v4053_v39, %v4049_v37  ;;  %v847_v44 = vrot.slane %v4053_v39, %v4059_v42  ;;  %v840_v45 = vrot.slane %v4053_v39, %v4061_v43 }
 0x320   : > { %v861_v48 = vrot.slane %v4053_v39, %v4067_v46  ;;  %v854_v49 = vrot.slane %v4053_v39, %v4069_v47  ;;  %v875_v52 = vrot.slane %v4053_v39, %v4075_v50  ;;  %v868_v53 = vrot.slane %v4053_v39, %v4077_v51 }
 0x321   : > { %835 = vbcast.lane.b32.xlu1 %v833_v40, 256  ;;  %828 = vbcast.lane.b32.xlu0 %v826_v41, 256  ;;  %vm764_vm11 = vcmp.gt.f32.partialorder %v4053_v39, -20.0 }
 0x325   : > { %849 = vbcast.lane.b32.xlu1 %v847_v44, 256  ;;  %842 = vbcast.lane.b32.xlu0 %v840_v45, 256 }
 0x329   : > { %863 = vbcast.lane.b32.xlu1 %v861_v48, 256  ;;  %856 = vbcast.lane.b32.xlu0 %v854_v49, 256 }
 0x32d   : > { %877 = vbcast.lane.b32.xlu1 %v875_v52, 256  ;;  %870 = vbcast.lane.b32.xlu0 %v868_v53, 256 }
 0x393   : > { %v836_v56 = vpop.permute.xlu1 %835  ;;  %v829_v57 = vpop.permute.xlu0 %828 }
 0x394   : > { %v1004_v58 = vmul.f32 %v4086_v54, %v836_v56  ;;  %v1003_v59 = vmul.f32 %v4086_v54, %v829_v57 }
 0x396   : > { %v1040_v60 = vadd.f32 %v4091_v55, %v1004_v58  ;;  %v1039_v61 = vadd.f32 %v4091_v55, %v1003_v59  ;;  %v721_v58 = vmul.f32 0.35355338, %v4041_v21 }
 0x397   : > { %v850_v62 = vpop.permute.xlu1 %849  ;;  %v843_v63 = vpop.permute.xlu0 %842 }
 0x398   : > { %v1072_v2 = vmax.f32 %v1040_v60, 0.0  ;;  %v1071_v3 = vmax.f32 %v1039_v61, 0.0  ;;  %v1006_v4 = vmul.f32 %v4086_v54, %v850_v62  ;;  %v1005_v5 = vmul.f32 %v4086_v54, %v843_v63 }
 0x399   : > { %v3382_v59 = vadd.f32 -1.0, %v721_v58  ;;  %v4132_v60 = vmul.f32 0.35355338, %v4045_v29  ;;  %v723_v62 = vmul.f32 0.35355338, %v4043_v26 }
 0x39a   : > { %v1042_v6 = vadd.f32 %v4091_v55, %v1006_v4  ;;  %v1041_v7 = vadd.f32 %v4091_v55, %v1005_v5  ;;  %v1108_v8 = vmul.f32 %v4100_v0, %v1072_v2  ;;  %v1107_v9 = vmul.f32 %v4100_v0, %v1071_v3 }
 0x39b   : > { %v864_v10 = vpop.permute.xlu1 %863  ;;  %v857_v12 = vpop.permute.xlu0 %856  ;;  %v3385_v61 = vadd.f32 -1.0, %v4132_v60  ;;  %v3384_v63 = vadd.f32 -1.0, %v723_v62 }
 0x39c   : > { %v1073_v13 = vmax.f32 %v1041_v7, 0.0  ;;  %v1008_v14 = vmul.f32 %v4086_v54, %v864_v10  ;;  %v1007_v15 = vmul.f32 %v4086_v54, %v857_v12  ;;  %v1074_v16 = vmax.f32 %v1042_v6, 0.0 }
 0x39d   : > { %v1159_v17 = vsel %vm1131_vm3, %v1108_v8, 0.0  ;;  %v1156_v18 = vsel %vm1131_vm3, %v1107_v9, 0.0 }
 0x39e   : > { %v1044_v19 = vadd.f32 %v4091_v55, %v1008_v14  ;;  %v1043_v20 = vadd.f32 %v4091_v55, %v1007_v15  ;;  %1160 = vadd.xlane.f32.xlu1 %v1159_v17  ;;  %1157 = vadd.xlane.f32.xlu0 %v1156_v18  ;;  %v1109_v22 = vmul.f32 %v4100_v0, %v1073_v13 }
 0x39f   : > { %v878_v23 = vpop.permute.xlu1 %877  ;;  %v871_v24 = vpop.permute.xlu0 %870  ;;  %v1110_v32 = vmul.f32 %v4100_v0, %v1074_v16 }
 0x3a0   : > { %v1075_v25 = vmax.f32 %v1043_v20, 0.0  ;;  %v1010_v27 = vmul.f32 %v4086_v54, %v878_v23  ;;  %v1009_v28 = vmul.f32 %v4086_v54, %v871_v24  ;;  %v1076_v30 = vmax.f32 %v1044_v19, 0.0 }
 0x3a1   : > { %v1162_v31 = vsel %vm1131_vm3, %v1109_v22, 0.0  ;;  %v1165_v45 = vsel %vm1131_vm3, %v1110_v32, 0.0 }
 0x3a2   : > { %v1046_v33 = vadd.f32 %v4091_v55, %v1010_v27  ;;  %v1045_v35 = vadd.f32 %v4091_v55, %v1009_v28  ;;  %1163 = vadd.xlane.f32.xlu0 %v1162_v31  ;;  %v1111_v36 = vmul.f32 %v4100_v0, %v1075_v25  ;;  %v1112_v48 = vmul.f32 %v4100_v0, %v1076_v30 }
 0x3a4   : > { %v1077_v40 = vmax.f32 %v1045_v35, 0.0  ;;  %v1168_v41 = vsel %vm1131_vm3, %v1111_v36, 0.0  ;;  %v1078_v44 = vmax.f32 %v1046_v33, 0.0  ;;  %v1171_v53 = vsel %vm1131_vm3, %v1112_v48, 0.0 }
 0x3a5   : > { %1169 = vadd.xlane.f32.xlu1 %v1168_v41 }
 0x3a6   : > { %1166 = vadd.xlane.f32.xlu0 %v1165_v45  ;;  %v1113_v49 = vmul.f32 %v4100_v0, %v1077_v40  ;;  %v1114_v56 = vmul.f32 %v4100_v0, %v1078_v44 }
 0x3a8   : > { %v1174_v52 = vsel %vm1131_vm3, %v1113_v49, 0.0  ;;  %v1177_v57 = vsel %vm1131_vm3, %v1114_v56, 0.0 }
 0x3a9   : > { %1175 = vadd.xlane.f32.xlu1 %v1174_v52 }
 0x3aa   : > { %1172 = vadd.xlane.f32.xlu0 %v1171_v53 }
 0x3ae   : > { %1178 = vadd.xlane.f32.xlu0 %v1177_v57 }
 0x3ba   : > { %731 = vperm.xlu1 %3592, %v3382_v59  }
 0x3be   : > { %746 = vperm.xlu1 %3592, %v3385_v61  }
 0x3c4   : > { %741 = vperm.xlu0 %3593, %v3384_v63  }
 0x42b   : > { %v1161_v2 = vpop.xlane.xlu1 %1160  ;;  %v1158_v4 = vpop.xlane.xlu0 %1157 }
 0x42c   : > { %v1301_v17 = vrot.slane %v1161_v2, %v4047_v34  ;;  %v1297_v18 = vrot.slane %v1158_v4, %v4047_v34 }
 0x42e   : > { %v1404_v25 = vsel %vm1390_vm4, %v1301_v17, %v1297_v18 }
 0x42f   : > { %v1164_v6 = vpop.xlane.xlu0 %1163 }
 0x430   : > { %v1305_v20 = vrot.slane %v1164_v6, %v4047_v34 }
 0x432   : > { %v1170_v3 = vpop.xlane.xlu1 %1169  ;;  %v1405_v27 = vsel %vm1392_vm5, %v1305_v20, %v1404_v25 }
 0x433   : > { %v1167_v10 = vpop.xlane.xlu0 %1166  ;;  %v1313_v28 = vrot.slane %v1170_v3, %v4047_v34 }
 0x434   : > { %v1309_v22 = vrot.slane %v1167_v10, %v4047_v34 }
 0x436   : > { %v1176_v5 = vpop.xlane.xlu1 %1175  ;;  %v1406_v30 = vsel %vm1394_vm6, %v1309_v22, %v1405_v27  ;;  %v4227_v22 = vld [vmem:[%s5038_s6 + $0x1] sm:$0x1] }
 0x437   : > { %v1173_v12 = vpop.xlane.xlu0 %1172  ;;  %v1321_v35 = vrot.slane %v1176_v5, %v4047_v34  ;;  %v1407_v36 = vsel %vm1396_vm7, %v1313_v28, %v1406_v30 }
 0x438   : > { %v1317_v31 = vrot.slane %v1173_v12, %v4047_v34 }
 0x43a   : > { %v732_v7 = vpop.permute.xlu1 %731  ;;  %v1408_v40 = vsel %vm1398_vm8, %v1317_v31, %v1407_v36 }
 0x43b   : > { %v749_v8 = vsub.f32 %v721_v58, %v732_v7  ;;  %v1179_v15 = vpop.xlane.xlu0 %1178  ;;  %v1409_v48 = vsel %vm1400_vm9, %v1321_v35, %v1408_v40 }
 0x43c   : > { %v1325_v41 = vrot.slane %v1179_v15, %v4047_v34  ;;  %v4218_v15 = vld [vmem:[%s5038_s6] sm:$0x1] }
 0x43d   : > { %v4136_v21 = vmin.f32 %v749_v8, 3.0 }
 0x43e   : > { %v747_v45 = vpop.permute.xlu1 %746  ;;  %v1410_v49 = vsel %vm1402_vm10, %v1325_v41, %v1409_v48 }
 0x43f   : > { %v791_v29 = vrot.slane %v4136_v21, %v4059_v42  ;;  %v770_v9 = vrot.slane %v4136_v21, %v4049_v37  ;;  %v777_v26 = vrot.slane %v4136_v21, %v4051_v38  ;;  %v784_v13 = vrot.slane %v4136_v21, %v4061_v43 }
 0x440   : > { %v798_v14 = vrot.slane %v4136_v21, %v4069_v47  ;;  %v805_v16 = vrot.slane %v4136_v21, %v4067_v46  ;;  %v812_v24 = vrot.slane %v4136_v21, %v4077_v51  ;;  %v819_v33 = vrot.slane %v4136_v21, %v4075_v50 }
 0x441   : > { %793 = vbcast.lane.b32.xlu1 %v791_v29, 256  ;;  %772 = vbcast.lane.b32.xlu0 %v770_v9, 256  ;;  %v752_v52 = vsub.f32 %v4132_v60, %v747_v45  ;;  %v4177_v56 = vsel %vm764_vm11, %v1410_v49, 0.0  ;;  %v4246_v49 = vld [vmem:[%s5038_s6 + $0x2] sm:$0x1]  ;;  %vm763_vm13 = vcmp.gt.f32.partialorder %v4136_v21, -20.0 }
 0x442   : > { %v1436_v59 = vsel %vm412_vm2, %v4177_v56, 0.0 }
 0x443   : > { %v742_v19 = vpop.permute.xlu0 %741  ;;  %v4179_v57 = vmin.f32 %v752_v52, 3.0 }
 0x444   : > { %v751_v23 = vsub.f32 %v723_v62, %v742_v19 }
 0x445   : > { %779 = vbcast.lane.b32.xlu0 %v777_v26, 256  ;;  %v945_v60 = vrot.slane %v4179_v57, %v4051_v38  ;;  %v952_v39 = vrot.slane %v4179_v57, %v4061_v43  ;;  %v959_v61 = vrot.slane %v4179_v57, %v4059_v42  ;;  %v973_v62 = vrot.slane %v4179_v57, %v4067_v46 }
 0x446   : > { %v4161_v32 = vmin.f32 %v751_v23, 3.0  ;;  %v987_v2 = vrot.slane %v4179_v57, %v4075_v50  ;;  %v938_v5 = vrot.slane %v4179_v57, %v4049_v37  ;;  %v966_v8 = vrot.slane %v4179_v57, %v4069_v47 }
 0x447   : > { %v980_v29 = vrot.slane %v4179_v57, %v4077_v51  ;;  %vm766_vm15 = vcmp.gt.f32.partialorder %v4179_v57, -20.0 }
 0x448   : > { %v889_v44 = vrot.slane %v4161_v32, %v4051_v38  ;;  %v903_v53 = vrot.slane %v4161_v32, %v4059_v42  ;;  %v917_v58 = vrot.slane %v4161_v32, %v4067_v46  ;;  %v882_v63 = vrot.slane %v4161_v32, %v4049_v37 }
 0x449   : > { %786 = vbcast.lane.b32.xlu0 %v784_v13, 256  ;;  %v896_v3 = vrot.slane %v4161_v32, %v4061_v43  ;;  %v910_v4 = vrot.slane %v4161_v32, %v4069_v47  ;;  %v924_v6 = vrot.slane %v4161_v32, %v4077_v51  ;;  %v931_v7 = vrot.slane %v4161_v32, %v4075_v50 }
 0x44a   : > { %vm765_vm14 = vcmp.gt.f32.partialorder %v4161_v32, -20.0 }
 0x44d   : > { %800 = vbcast.lane.b32.xlu0 %v798_v14, 256 }
 0x451   : > { %807 = vbcast.lane.b32.xlu0 %v805_v16, 256 }
 0x455   : > { %814 = vbcast.lane.b32.xlu0 %v812_v24, 256 }
 0x459   : > { %821 = vbcast.lane.b32.xlu0 %v819_v33, 256 }
 0x45d   : > { %891 = vbcast.lane.b32.xlu0 %v889_v44, 256 }
 0x461   : > { %905 = vbcast.lane.b32.xlu0 %v903_v53, 256 }
 0x465   : > { %1437 = vadd.xlane.f32.xlu1 %v1436_v59  ;;  %919 = vbcast.lane.b32.xlu0 %v917_v58, 256 }
 0x469   : > { %947 = vbcast.lane.b32.xlu0 %v945_v60, 256 }
 0x46d   : > { %954 = vbcast.lane.b32.xlu0 %v952_v39, 256 }
 0x471   : > { %961 = vbcast.lane.b32.xlu0 %v959_v61, 256 }
 0x475   : > { %975 = vbcast.lane.b32.xlu0 %v973_v62, 256 }
 0x476   : > { %884 = vbcast.lane.b32.xlu1 %v882_v63, 256 }
 0x479   : > { %989 = vbcast.lane.b32.xlu0 %v987_v2, 256 }
 0x47a   : > { %898 = vbcast.lane.b32.xlu1 %v896_v3, 256 }
 0x47e   : > { %912 = vbcast.lane.b32.xlu1 %v910_v4, 256 }
 0x482   : > { %940 = vbcast.lane.b32.xlu1 %v938_v5, 256 }
 0x486   : > { %926 = vbcast.lane.b32.xlu1 %v924_v6, 256 }
 0x48a   : > { %933 = vbcast.lane.b32.xlu1 %v931_v7, 256 }
 0x48e   : > { %968 = vbcast.lane.b32.xlu1 %v966_v8, 256 }
 0x492   : > { %982 = vbcast.lane.b32.xlu1 %v980_v29, 256 }
 0x4b3   : > { %v773_v9 = vpop.permute.xlu0 %772  ;;  %v4211_v13 = vpop.permute.xlu1 %793 }
 0x4b4   : > { %v995_v35 = vmul.f32 %v4086_v54, %v773_v9 }
 0x4b6   : > { %v1031_v3 = vadd.f32 %v4091_v55, %v995_v35 }
 0x4b7   : > { %v780_v10 = vpop.permute.xlu0 %779 }
 0x4bb   : > { %v787_v26 = vpop.permute.xlu0 %786 }
 0x4bc   : > { %v997_v4 = vmul.f32 %v4086_v54, %v787_v26  ;;  %v1063_v26 = vmax.f32 %v1031_v3, 0.0 }
 0x4bf   : > { %v801_v12 = vpop.permute.xlu0 %800 }
 0x4c3   : > { %v4213_v14 = vpop.permute.xlu0 %807 }
 0x4c7   : > { %v815_v23 = vpop.permute.xlu0 %814 }
 0x4cb   : > { %v822_v63 = vpop.permute.xlu0 %821 }
 0x4f2   : > { %v1438_v16 = vpop.xlane.xlu1 %1437 }
 0x4f3   : > { %v1488_v17 = vrot.slane %v1438_v16, %v4051_v38  ;;  %v1484_v18 = vrot.slane %v1438_v16, %v4049_v37  ;;  %v1492_v19 = vrot.slane %v1438_v16, %v4061_v43  ;;  %v1500_v20 = vrot.slane %v1438_v16, %v4069_v47 }
 0x4f4   : > { %v1496_v24 = vrot.slane %v1438_v16, %v4059_v42  ;;  %v1508_v25 = vrot.slane %v1438_v16, %v4077_v51  ;;  %v1504_v27 = vrot.slane %v1438_v16, %v4067_v46  ;;  %v1512_v48 = vrot.slane %v1438_v16, %v4075_v50 }
 0x4f5   : > { %v1618_v28 = vmul.f32 %v1488_v17, %v4218_v15  ;;  %v1617_v30 = vmul.f32 %v1484_v18, %v4218_v15  ;;  %v1619_v31 = vmul.f32 %v1492_v19, %v4218_v15  ;;  %v1621_v33 = vmul.f32 %v1500_v20, %v4218_v15 }
 0x4f6   : > { %v1620_v36 = vmul.f32 %v1496_v24, %v4218_v15  ;;  %v1623_v40 = vmul.f32 %v1508_v25, %v4218_v15  ;;  %v885_v52 = vpop.permute.xlu1 %884  ;;  %v1622_v60 = vmul.f32 %v1504_v27, %v4218_v15  ;;  %v1624_v9 = vmul.f32 %v1512_v48, %v4218_v15 }
 0x4f7   : > { %v1650_v41 = vadd.f32 %v1618_v28, %v4227_v22  ;;  %v1649_v44 = vadd.f32 %v1617_v30, %v4227_v22  ;;  %v1651_v45 = vadd.f32 %v1619_v31, %v4227_v22  ;;  %v1653_v53 = vadd.f32 %v1621_v33, %v4227_v22  ;;  %v892_v28 = vpop.permute.xlu0 %891 }
 0x4f8   : > { %v1652_v58 = vadd.f32 %v1620_v36, %v4227_v22  ;;  %v1655_v59 = vadd.f32 %v1623_v40, %v4227_v22  ;;  %v1654_v29 = vadd.f32 %v1622_v60, %v4227_v22  ;;  %v996_v24 = vmul.f32 %v4086_v54, %v780_v10 }
 0x4f9   : > { %v1682_v39 = vmax.f32 %v1650_v41, 0.0  ;;  %v1681_v61 = vmax.f32 %v1649_v44, 0.0  ;;  %v1683_v62 = vmax.f32 %v1651_v45, 0.0  ;;  %v1685_v2 = vmax.f32 %v1653_v53, 0.0 }
 0x4fa   : > { %v1684_v7 = vmax.f32 %v1652_v58, 0.0  ;;  %v1687_v8 = vmax.f32 %v1655_v59, 0.0  ;;  %v899_v20 = vpop.permute.xlu1 %898  ;;  %v1033_v25 = vadd.f32 %v4091_v55, %v997_v4  ;;  %v999_v27 = vmul.f32 %v4086_v54, %v801_v12 }
 0x4fb   : > { %v1714_v5 = vmul.f32 %v1682_v39, %v4246_v49  ;;  %v1713_v6 = vmul.f32 %v1681_v61, %v4246_v49  ;;  %v1715_v18 = vmul.f32 %v1683_v62, %v4246_v49  ;;  %v1717_v19 = vmul.f32 %v1685_v2, %v4246_v49  ;;  %v906_v61 = vpop.permute.xlu0 %905 }
 0x4fc   : > { %v1716_v30 = vmul.f32 %v1684_v7, %v4246_v49  ;;  %v1686_v31 = vmax.f32 %v1654_v29, 0.0  ;;  %v1719_v36 = vmul.f32 %v1687_v8, %v4246_v49  ;;  %v1656_v40 = vadd.f32 %v1624_v9, %v4227_v22 }
 0x4fd   : > { %v1765_v16 = vsel %vm1737_vm12, %v1714_v5, 0.0  ;;  %v1762_v17 = vsel %vm1737_vm12, %v1713_v6, 0.0  ;;  %v1768_v33 = vsel %vm1737_vm12, %v1715_v18, 0.0  ;;  %v1774_v35 = vsel %vm1737_vm12, %v1717_v19, 0.0 }
 0x4fe   : > { %1766 = vadd.xlane.f32.xlu0 %v1765_v16  ;;  %1763 = vadd.xlane.f32.xlu1 %v1762_v17  ;;  %v998_v10 = vmul.f32 %v4086_v54, %v4211_v13  ;;  %v1032_v41 = vadd.f32 %v4091_v55, %v996_v24  ;;  %v1065_v12 = vmax.f32 %v1033_v25, 0.0  ;;  %v1035_v44 = vadd.f32 %v4091_v55, %v999_v27  ;;  %v913_v48 = vpop.permute.xlu1 %912 }
 0x4ff   : > { %v1001_v45 = vmul.f32 %v4086_v54, %v815_v23  ;;  %v1099_v53 = vmul.f32 %v4100_v0, %v1063_v26  ;;  %v1771_v58 = vsel %vm1737_vm12, %v1716_v30, 0.0  ;;  %v1780_v59 = vsel %vm1737_vm12, %v1719_v36, 0.0  ;;  %v920_v18 = vpop.permute.xlu0 %919 }
 0x500   : > { %v1718_v60 = vmul.f32 %v1686_v31, %v4246_v49  ;;  %v1688_v39 = vmax.f32 %v1656_v40, 0.0  ;;  %v1034_v13 = vadd.f32 %v4091_v55, %v998_v10  ;;  %v1064_v62 = vmax.f32 %v1032_v41, 0.0 }
 0x501   : > { %v1067_v2 = vmax.f32 %v1035_v44, 0.0  ;;  %v1000_v23 = vmul.f32 %v4086_v54, %v4213_v14  ;;  %v1132_v3 = vsel %vm1131_vm3, %v1099_v53, 0.0  ;;  %v1101_v4 = vmul.f32 %v4100_v0, %v1065_v12 }
 0x502   : > { %1769 = vadd.xlane.f32.xlu0 %v1768_v33  ;;  %1775 = vadd.xlane.f32.xlu1 %v1774_v35  ;;  %v1037_v5 = vadd.f32 %v4091_v55, %v1001_v45  ;;  %v1011_v6 = vmul.f32 %v4086_v54, %v885_v52  ;;  %v1777_v7 = vsel %vm1737_vm12, %v1718_v60, 0.0  ;;  %v1720_v8 = vmul.f32 %v1688_v39, %v4246_v49  ;;  %v941_v29 = vpop.permute.xlu1 %940 }
 0x503   : > { %v1066_v9 = vmax.f32 %v1034_v13, 0.0  ;;  %v1100_v16 = vmul.f32 %v4100_v0, %v1064_v62  ;;  %v1036_v14 = vadd.f32 %v4091_v55, %v1000_v23  ;;  %v1002_v17 = vmul.f32 %v4086_v54, %v822_v63  ;;  %v948_v44 = vpop.permute.xlu0 %947 }
 0x504   : > { %v1138_v19 = vsel %vm1131_vm3, %v1101_v4, 0.0  ;;  %v1103_v26 = vmul.f32 %v4100_v0, %v1067_v2  ;;  %v1069_v52 = vmax.f32 %v1037_v5, 0.0  ;;  %v1047_v24 = vadd.f32 %v4091_v55, %v1011_v6 }
 0x505   : > { %v1013_v25 = vmul.f32 %v4086_v54, %v899_v20  ;;  %v1783_v27 = vsel %vm1737_vm12, %v1720_v8, 0.0  ;;  %v1135_v30 = vsel %vm1131_vm3, %v1100_v16, 0.0  ;;  %v1102_v31 = vmul.f32 %v4100_v0, %v1066_v9 }
 0x506   : > { %1772 = vadd.xlane.f32.xlu0 %v1771_v58  ;;  %1781 = vadd.xlane.f32.xlu1 %v1780_v59  ;;  %v1068_v33 = vmax.f32 %v1036_v14, 0.0  ;;  %v1038_v63 = vadd.f32 %v4091_v55, %v1002_v17  ;;  %v1012_v35 = vmul.f32 %v4086_v54, %v892_v28  ;;  %v927_v36 = vpop.permute.xlu1 %926  ;;  %v1144_v40 = vsel %vm1131_vm3, %v1103_v26, 0.0 }
 0x507   : > { %v1079_v10 = vmax.f32 %v1047_v24, 0.0  ;;  %v1049_v41 = vadd.f32 %v4091_v55, %v1013_v25  ;;  %v1015_v20 = vmul.f32 %v4086_v54, %v913_v48  ;;  %v1105_v12 = vmul.f32 %v4100_v0, %v1069_v52  ;;  %v955_v4 = vpop.permute.xlu0 %954 }
 0x508   : > { %v1014_v45 = vmul.f32 %v4086_v54, %v906_v61  ;;  %v1141_v53 = vsel %vm1131_vm3, %v1102_v31, 0.0  ;;  %v1070_v58 = vmax.f32 %v1038_v63, 0.0  ;;  %v1048_v28 = vadd.f32 %v4091_v55, %v1012_v35 }
 0x509   : > { %v1019_v59 = vmul.f32 %v4086_v54, %v941_v29  ;;  %v1104_v60 = vmul.f32 %v4100_v0, %v1068_v33  ;;  %v1081_v39 = vmax.f32 %v1049_v41, 0.0  ;;  %v1051_v13 = vadd.f32 %v4091_v55, %v1015_v20 }
 0x50a   : > { %1778 = vadd.xlane.f32.xlu0 %v1777_v7  ;;  %1133 = vadd.xlane.f32.xlu1 %v1132_v3  ;;  %v1150_v48 = vsel %vm1131_vm3, %v1105_v12, 0.0  ;;  %v1115_v62 = vmul.f32 %v4100_v0, %v1079_v10  ;;  %v934_v2 = vpop.permute.xlu1 %933  ;;  %v1050_v61 = vadd.f32 %v4091_v55, %v1014_v45  ;;  %v1016_v23 = vmul.f32 %v4086_v54, %v920_v18 }
 0x50b   : > { %v1080_v3 = vmax.f32 %v1048_v28, 0.0  ;;  %v1055_v5 = vadd.f32 %v4091_v55, %v1019_v59  ;;  %v1147_v6 = vsel %vm1131_vm3, %v1104_v60, 0.0  ;;  %v1106_v7 = vmul.f32 %v4100_v0, %v1070_v58  ;;  %v962_v33 = vpop.permute.xlu0 %961 }
 0x50c   : > { %v1083_v8 = vmax.f32 %v1051_v13, 0.0  ;;  %v1017_v29 = vmul.f32 %v4086_v54, %v927_v36  ;;  %v1180_v9 = vsel %vm1131_vm3, %v1115_v62, 0.0  ;;  %v1117_v16 = vmul.f32 %v4100_v0, %v1081_v39 }
 0x50d   : > { %v1082_v14 = vmax.f32 %v1050_v61, 0.0  ;;  %v1052_v17 = vadd.f32 %v4091_v55, %v1016_v23  ;;  %v1020_v18 = vmul.f32 %v4086_v54, %v948_v44  ;;  %v1153_v52 = vsel %vm1131_vm3, %v1106_v7, 0.0 }
 0x50e   : > { %1784 = vadd.xlane.f32.xlu0 %v1783_v27  ;;  %1139 = vadd.xlane.f32.xlu1 %v1138_v19  ;;  %v1087_v19 = vmax.f32 %v1055_v5, 0.0  ;;  %v969_v26 = vpop.permute.xlu1 %968  ;;  %v1116_v24 = vmul.f32 %v4100_v0, %v1080_v3  ;;  %v1053_v25 = vadd.f32 %v4091_v55, %v1017_v29  ;;  %v1018_v27 = vmul.f32 %v4086_v54, %v934_v2 }
 0x50f   : > { %v1119_v31 = vmul.f32 %v4100_v0, %v1083_v8  ;;  %v1084_v63 = vmax.f32 %v1052_v17, 0.0  ;;  %v1118_v35 = vmul.f32 %v4100_v0, %v1082_v14  ;;  %v1056_v36 = vadd.f32 %v4091_v55, %v1020_v18  ;;  %v976_v13 = vpop.permute.xlu0 %975 }
 0x510   : > { %v1183_v10 = vsel %vm1131_vm3, %v1116_v24, 0.0  ;;  %v1123_v41 = vmul.f32 %v4100_v0, %v1087_v19  ;;  %v1085_v20 = vmax.f32 %v1053_v25, 0.0  ;;  %v1054_v12 = vadd.f32 %v4091_v55, %v1018_v27 }
 0x511   : > { %v1023_v44 = vmul.f32 %v4086_v54, %v969_v26  ;;  %v1192_v45 = vsel %vm1131_vm3, %v1119_v31, 0.0  ;;  %v1189_v58 = vsel %vm1131_vm3, %v1118_v35, 0.0  ;;  %v1120_v28 = vmul.f32 %v4100_v0, %v1084_v63 }
 0x512   : > { %1136 = vadd.xlane.f32.xlu0 %v1135_v30  ;;  %1145 = vadd.xlane.f32.xlu1 %v1144_v40  ;;  %v1186_v30 = vsel %vm1131_vm3, %v1117_v16, 0.0  ;;  %v1021_v40 = vmul.f32 %v4086_v54, %v955_v4  ;;  %v1088_v59 = vmax.f32 %v1056_v36, 0.0  ;;  %v1022_v39 = vmul.f32 %v4086_v54, %v962_v33 }
 0x513   : > { %v1086_v62 = vmax.f32 %v1054_v12, 0.0  ;;  %v1059_v2 = vadd.f32 %v4091_v55, %v1023_v44  ;;  %v1121_v23 = vmul.f32 %v4100_v0, %v1085_v20  ;;  %v1195_v3 = vsel %vm1131_vm3, %v1120_v28, 0.0  ;;  %v990_v14 = vpop.permute.xlu0 %989 }
 0x514   : > { %v1057_v60 = vadd.f32 %v4091_v55, %v1021_v40  ;;  %v1058_v5 = vadd.f32 %v4091_v55, %v1022_v39  ;;  %v1124_v7 = vmul.f32 %v4100_v0, %v1088_v59 }
 0x515   : > { %v1091_v8 = vmax.f32 %v1059_v2, 0.0  ;;  %v1122_v16 = vmul.f32 %v4100_v0, %v1086_v62 }
 0x516   : > { %1142 = vadd.xlane.f32.xlu0 %v1141_v53  ;;  %1151 = vadd.xlane.f32.xlu1 %v1150_v48  ;;  %v983_v53 = vpop.permute.xlu1 %982  ;;  %v1204_v48 = vsel %vm1131_vm3, %v1123_v41, 0.0  ;;  %v1089_v4 = vmax.f32 %v1057_v60, 0.0  ;;  %v1090_v17 = vmax.f32 %v1058_v5, 0.0  ;;  %v1207_v19 = vsel %vm1131_vm3, %v1124_v7, 0.0 }
 0x517   : > { %v1025_v61 = vmul.f32 %v4086_v54, %v983_v53  ;;  %v1201_v25 = vsel %vm1131_vm3, %v1122_v16, 0.0  ;;  %v1127_v27 = vmul.f32 %v4100_v0, %v1091_v8 }
 0x518   : > { %v1125_v26 = vmul.f32 %v4100_v0, %v1089_v4  ;;  %v1126_v31 = vmul.f32 %v4100_v0, %v1090_v17 }
 0x519   : > { %v1061_v29 = vadd.f32 %v4091_v55, %v1025_v61  ;;  %v1216_v35 = vsel %vm1131_vm3, %v1127_v27, 0.0 }
 0x51a   : > { %1148 = vadd.xlane.f32.xlu0 %v1147_v6  ;;  %1181 = vadd.xlane.f32.xlu1 %v1180_v9  ;;  %v1024_v6 = vmul.f32 %v4086_v54, %v976_v13  ;;  %v1198_v9 = vsel %vm1131_vm3, %v1121_v23, 0.0 }
 0x51b   : > { %v1093_v24 = vmax.f32 %v1061_v29, 0.0 }
 0x51c   : > { %v1060_v18 = vadd.f32 %v4091_v55, %v1024_v6 }
 0x51d   : > { %v1129_v36 = vmul.f32 %v4100_v0, %v1093_v24 }
 0x51e   : > { %1187 = vadd.xlane.f32.xlu1 %v1186_v30  ;;  %1154 = vadd.xlane.f32.xlu0 %v1153_v52  ;;  %v1026_v52 = vmul.f32 %v4086_v54, %v990_v14  ;;  %v1210_v30 = vsel %vm1131_vm3, %v1125_v26, 0.0  ;;  %v1092_v33 = vmax.f32 %v1060_v18, 0.0 }
 0x51f   : > { %v1222_v40 = vsel %vm1131_vm3, %v1129_v36, 0.0 }
 0x520   : > { %v1062_v63 = vadd.f32 %v4091_v55, %v1026_v52  ;;  %v1128_v41 = vmul.f32 %v4100_v0, %v1092_v33 }
 0x522   : > { %1193 = vadd.xlane.f32.xlu1 %v1192_v45  ;;  %1184 = vadd.xlane.f32.xlu0 %v1183_v10  ;;  %v1094_v54 = vmax.f32 %v1062_v63, 0.0  ;;  %v1213_v10 = vsel %vm1131_vm3, %v1126_v31, 0.0  ;;  %v1219_v20 = vsel %vm1131_vm3, %v1128_v41, 0.0 }
 0x524   : > { %v1130_v12 = vmul.f32 %v4100_v0, %v1094_v54 }
 0x526   : > { %1205 = vadd.xlane.f32.xlu1 %v1204_v48  ;;  %1190 = vadd.xlane.f32.xlu0 %v1189_v58  ;;  %v1225_v55 = vsel %vm1131_vm3, %v1130_v12, 0.0 }
 0x52a   : > { %1199 = vadd.xlane.f32.xlu1 %v1198_v9  ;;  %1196 = vadd.xlane.f32.xlu0 %v1195_v3 }
 0x52e   : > { %1202 = vadd.xlane.f32.xlu1 %v1201_v25  ;;  %1208 = vadd.xlane.f32.xlu0 %v1207_v19 }
 0x532   : > { %1217 = vadd.xlane.f32.xlu1 %v1216_v35  ;;  %1211 = vadd.xlane.f32.xlu0 %v1210_v30 }
 0x536   : > { %1223 = vadd.xlane.f32.xlu1 %v1222_v40  ;;  %1214 = vadd.xlane.f32.xlu0 %v1213_v10 }
 0x53a   : > { %1220 = vadd.xlane.f32.xlu0 %v1219_v20 }
 0x53e   : > { %1226 = vadd.xlane.f32.xlu0 %v1225_v55 }
 0x58b   : > { %v1764_v44 = vpop.xlane.xlu1 %1763  ;;  %v1767_v45 = vpop.xlane.xlu0 %1766 }
 0x58c   : > { %v1869_v28 = vrot.slane %v1764_v44, %v4049_v37  ;;  %v1873_v59 = vrot.slane %v1767_v45, %v4049_v37 }
 0x58e   : > { %v2001_v48 = vsel %vm1390_vm4, %v1873_v59, %v1869_v28 }
 0x58f   : > { %v1776_v53 = vpop.xlane.xlu1 %1775  ;;  %v1770_v58 = vpop.xlane.xlu0 %1769 }
 0x590   : > { %v1877_v60 = vrot.slane %v1770_v58, %v4049_v37  ;;  %v1885_v61 = vrot.slane %v1776_v53, %v4049_v37 }
 0x592   : > { %v2002_v62 = vsel %vm1392_vm5, %v1877_v60, %v2001_v48 }
 0x593   : > { %v1782_v39 = vpop.xlane.xlu1 %1781  ;;  %v1773_v13 = vpop.xlane.xlu0 %1772 }
 0x594   : > { %v1881_v0 = vrot.slane %v1773_v13, %v4049_v37  ;;  %v1893_v7 = vrot.slane %v1782_v39, %v4049_v37 }
 0x596   : > { %v2003_v2 = vsel %vm1394_vm6, %v1881_v0, %v2002_v62 }
 0x597   : > { %v1134_v23 = vpop.xlane.xlu1 %1133  ;;  %v1779_v3 = vpop.xlane.xlu0 %1778  ;;  %v2004_v5 = vsel %vm1396_vm7, %v1885_v61, %v2003_v2 }
 0x598   : > { %v1889_v4 = vrot.slane %v1779_v3, %v4049_v37  ;;  %v1265_v26 = vrot.slane %v1134_v23, %v4047_v34 }
 0x59a   : > { %v2005_v6 = vsel %vm1398_vm8, %v1889_v4, %v2004_v5 }
 0x59b   : > { %v1140_v8 = vpop.xlane.xlu1 %1139  ;;  %v1785_v29 = vpop.xlane.xlu0 %1784  ;;  %v2006_v16 = vsel %vm1400_vm9, %v1893_v7, %v2005_v6 }
 0x59c   : > { %v1897_v9 = vrot.slane %v1785_v29, %v4049_v37  ;;  %v1273_v27 = vrot.slane %v1140_v8, %v4047_v34 }
 0x59e   : > { %v2007_v14 = vsel %vm1402_vm10, %v1897_v9, %v2006_v16 }
 0x59f   : > { %v1146_v17 = vpop.xlane.xlu1 %1145  ;;  %v1137_v18 = vpop.xlane.xlu0 %1136  ;;  %v4384_v19 = vmul.f32 %v2007_v14, %v4177_v56 }
 0x5a0   : > { %v1269_v52 = vrot.slane %v1137_v18, %v4047_v34  ;;  %v1281_v35 = vrot.slane %v1146_v17, %v4047_v34 }
 0x5a1   : > { %v2033_v24 = vsel %vm412_vm2, %v4384_v19, 0.0 }
 0x5a2   : > { %v1391_v25 = vsel %vm1390_vm4, %v1269_v52, %v1265_v26  ;;  %2034 = vadd.xlane.f32.xlu1 %v2033_v24 }
 0x5a3   : > { %v1152_v30 = vpop.xlane.xlu1 %1151  ;;  %v1143_v31 = vpop.xlane.xlu0 %1142  ;;  %v1393_v63 = vsel %vm1392_vm5, %v1273_v27, %v1391_v25 }
 0x5a4   : > { %v1277_v33 = vrot.slane %v1143_v31, %v4047_v34  ;;  %v1289_v20 = vrot.slane %v1152_v30, %v4047_v34 }
 0x5a6   : > { %v1395_v56 = vsel %vm1394_vm6, %v1277_v33, %v1393_v63 }
 0x5a7   : > { %v1182_v36 = vpop.xlane.xlu1 %1181  ;;  %v1149_v54 = vpop.xlane.xlu0 %1148  ;;  %v1397_v10 = vsel %vm1396_vm7, %v1281_v35, %v1395_v56 }
 0x5a8   : > { %v1285_v40 = vrot.slane %v1149_v54, %v4047_v34  ;;  %v1329_v60 = vrot.slane %v1182_v36, %v4047_v34 }
 0x5aa   : > { %v1399_v41 = vsel %vm1398_vm8, %v1285_v40, %v1397_v10 }
 0x5ab   : > { %v1188_v12 = vpop.xlane.xlu1 %1187  ;;  %v1155_v55 = vpop.xlane.xlu0 %1154  ;;  %v1401_v45 = vsel %vm1400_vm9, %v1289_v20, %v1399_v41 }
 0x5ac   : > { %v1293_v44 = vrot.slane %v1155_v55, %v4047_v34  ;;  %v1337_v0 = vrot.slane %v1188_v12, %v4047_v34 }
 0x5ae   : > { %v1403_v53 = vsel %vm1402_vm10, %v1293_v44, %v1401_v45 }
 0x5af   : > { %v1194_v58 = vpop.xlane.xlu1 %1193  ;;  %v1185_v28 = vpop.xlane.xlu0 %1184  ;;  %v4404_v59 = vsel %vm763_vm13, %v1403_v53, 0.0 }
 0x5b0   : > { %v1333_v39 = vrot.slane %v1185_v28, %v4047_v34  ;;  %v1433_v13 = vsel %vm412_vm2, %v4404_v59, 0.0  ;;  %v1345_v3 = vrot.slane %v1194_v58, %v4047_v34 }
 0x5b1   : > { %1434 = vadd.xlane.f32.xlu0 %v1433_v13 }
 0x5b2   : > { %v1411_v48 = vsel %vm1390_vm4, %v1333_v39, %v1329_v60 }
 0x5b3   : > { %v1206_v62 = vpop.xlane.xlu1 %1205  ;;  %v1191_v21 = vpop.xlane.xlu0 %1190  ;;  %v1412_v61 = vsel %vm1392_vm5, %v1337_v0, %v1411_v48 }
 0x5b4   : > { %v1341_v2 = vrot.slane %v1191_v21, %v4047_v34  ;;  %v1361_v30 = vrot.slane %v1206_v62, %v4047_v34 }
 0x5b6   : > { %v1413_v23 = vsel %vm1394_vm6, %v1341_v2, %v1412_v61 }
 0x5b7   : > { %v1200_v4 = vpop.xlane.xlu1 %1199  ;;  %v1197_v5 = vpop.xlane.xlu0 %1196  ;;  %v1414_v8 = vsel %vm1396_vm7, %v1345_v3, %v1413_v23 }
 0x5b8   : > { %v1349_v6 = vrot.slane %v1197_v5, %v4047_v34  ;;  %v1353_v7 = vrot.slane %v1200_v4, %v4047_v34 }
 0x5ba   : > { %v1415_v29 = vsel %vm1398_vm8, %v1349_v6, %v1414_v8 }
 0x5bb   : > { %v1203_v9 = vpop.xlane.xlu1 %1202  ;;  %v1209_v16 = vpop.xlane.xlu0 %1208  ;;  %v1416_v17 = vsel %vm1400_vm9, %v1353_v7, %v1415_v29 }
 0x5bc   : > { %v1357_v14 = vrot.slane %v1203_v9, %v4047_v34  ;;  %v1365_v24 = vrot.slane %v1209_v16, %v4047_v34 }
 0x5be   : > { %v1417_v18 = vsel %vm1402_vm10, %v1357_v14, %v1416_v17  ;;  %v1418_v63 = vsel %vm1390_vm4, %v1365_v24, %v1361_v30 }
 0x5bf   : > { %v1212_v26 = vpop.xlane.xlu0 %1211  ;;  %v4424_v52 = vsel %vm765_vm14, %v1417_v18, 0.0  ;;  %v1218_v31 = vpop.xlane.xlu1 %1217 }
 0x5c0   : > { %v1439_v25 = vsel %vm412_vm2, %v4424_v52, 0.0  ;;  %v1369_v27 = vrot.slane %v1212_v26, %v4047_v34  ;;  %v1377_v36 = vrot.slane %v1218_v31, %v4047_v34 }
 0x5c1   : > { %1440 = vadd.xlane.f32.xlu1 %v1439_v25 }
 0x5c2   : > { %v1419_v56 = vsel %vm1392_vm5, %v1369_v27, %v1418_v63 }
 0x5c3   : > { %v1215_v33 = vpop.xlane.xlu0 %1214  ;;  %v1224_v40 = vpop.xlane.xlu1 %1223 }
 0x5c4   : > { %v1373_v32 = vrot.slane %v1215_v33, %v4047_v34  ;;  %v1385_v12 = vrot.slane %v1224_v40, %v4047_v34 }
 0x5c6   : > { %v1420_v35 = vsel %vm1394_vm6, %v1373_v32, %v1419_v56 }
 0x5c7   : > { %v1221_v54 = vpop.xlane.xlu0 %1220  ;;  %v1421_v41 = vsel %vm1396_vm7, %v1377_v36, %v1420_v35 }
 0x5c8   : > { %v1381_v10 = vrot.slane %v1221_v54, %v4047_v34 }
 0x5ca   : > { %v1422_v20 = vsel %vm1398_vm8, %v1381_v10, %v1421_v41 }
 0x5cb   : > { %v1227_v55 = vpop.xlane.xlu0 %1226  ;;  %v1423_v45 = vsel %vm1400_vm9, %v1385_v12, %v1422_v20 }
 0x5cc   : > { %v1389_v44 = vrot.slane %v1227_v55, %v4047_v34 }
 0x5ce   : > { %v1424_v53 = vsel %vm1402_vm10, %v1389_v44, %v1423_v45 }
 0x5cf   : > { %v4444_v58 = vsel %vm766_vm15, %v1424_v53, 0.0 }
 0x5d0   : > { %v1442_v28 = vsel %vm412_vm2, %v4444_v58, 0.0 }
 0x5d1   : > { %1443 = vadd.xlane.f32.xlu0 %v1442_v28 }
 0x62f   : > { %v4448_v60 = vpop.xlane.xlu1 %2034 }
 0x630   : > { %v2081_v39 = vrot.slane %v4448_v60, %v4049_v37  ;;  %v2085_v34 = vrot.slane %v4448_v60, %v4051_v38  ;;  %v2089_v13 = vrot.slane %v4448_v60, %v4061_v43  ;;  %v2093_v57 = vrot.slane %v4448_v60, %v4059_v42 }
 0x631   : > { %v2097_v48 = vrot.slane %v4448_v60, %v4069_v47  ;;  %v2101_v0 = vrot.slane %v4448_v60, %v4067_v46  ;;  %v2105_v62 = vrot.slane %v4448_v60, %v4077_v51  ;;  %vm2431_vm3 = vcmp.gt.f32.partialorder %v4448_v60, 1.5 }
 0x632   : > { %v2214_v21 = vmul.f32 %v2081_v39, %v4218_v15  ;;  %v2215_v2 = vmul.f32 %v2085_v34, %v4218_v15  ;;  %v2216_v61 = vmul.f32 %v2089_v13, %v4218_v15  ;;  %v2217_v23 = vmul.f32 %v2093_v57, %v4218_v15 }
 0x633   : > { %v2218_v3 = vmul.f32 %v2097_v48, %v4218_v15  ;;  %v2219_v4 = vmul.f32 %v2101_v0, %v4218_v15  ;;  %v2220_v16 = vmul.f32 %v2105_v62, %v4218_v15  ;;  %v2109_v0 = vrot.slane %v4448_v60, %v4075_v50 }
 0x634   : > { %v2246_v5 = vadd.f32 %v2214_v21, %v4227_v22  ;;  %v2247_v6 = vadd.f32 %v2215_v2, %v4227_v22  ;;  %v2248_v7 = vadd.f32 %v2216_v61, %v4227_v22  ;;  %v2249_v8 = vadd.f32 %v2217_v23, %v4227_v22 }
 0x635   : > { %v2250_v29 = vadd.f32 %v2218_v3, %v4227_v22  ;;  %v2251_v9 = vadd.f32 %v2219_v4, %v4227_v22  ;;  %v2252_v31 = vadd.f32 %v2220_v16, %v4227_v22  ;;  %v2221_v4 = vmul.f32 %v2109_v0, %v4218_v15 }
 0x636   : > { %v2278_v14 = vmax.f32 %v2246_v5, 0.0  ;;  %v2279_v17 = vmax.f32 %v2247_v6, 0.0  ;;  %v2280_v18 = vmax.f32 %v2248_v7, 0.0  ;;  %v2281_v26 = vmax.f32 %v2249_v8, 0.0 }
 0x637   : > { %v2282_v27 = vmax.f32 %v2250_v29, 0.0  ;;  %v2283_v30 = vmax.f32 %v2251_v9, 0.0  ;;  %v2284_v35 = vmax.f32 %v2252_v31, 0.0  ;;  %v2253_v9 = vadd.f32 %v2221_v4, %v4227_v22 }
 0x638   : > { %v2310_v24 = vmul.f32 %v2278_v14, %v4246_v49  ;;  %v2311_v25 = vmul.f32 %v2279_v17, %v4246_v49  ;;  %v2312_v32 = vmul.f32 %v2280_v18, %v4246_v49  ;;  %v2313_v56 = vmul.f32 %v2281_v26, %v4246_v49 }
 0x639   : > { %v2314_v10 = vmul.f32 %v2282_v27, %v4246_v49  ;;  %v2315_v41 = vmul.f32 %v2283_v30, %v4246_v49  ;;  %v2316_v13 = vmul.f32 %v2284_v35, %v4246_v49  ;;  %v2285_v31 = vmax.f32 %v2253_v9, 0.0 }
 0x63a   : > { %v2358_v33 = vsel %vm1737_vm12, %v2310_v24, 0.0  ;;  %v2361_v63 = vsel %vm1737_vm12, %v2311_v25, 0.0  ;;  %v2364_v54 = vsel %vm1737_vm12, %v2312_v32, 0.0  ;;  %v2367_v40 = vsel %vm1737_vm12, %v2313_v56, 0.0 }
 0x63b   : > { %2359 = vadd.xlane.f32.xlu1 %v2358_v33  ;;  %2362 = vadd.xlane.f32.xlu0 %v2361_v63  ;;  %v2370_v39 = vsel %vm1737_vm12, %v2314_v10, 0.0  ;;  %v2373_v34 = vsel %vm1737_vm12, %v2315_v41, 0.0  ;;  %v2376_v23 = vsel %vm1737_vm12, %v2316_v13, 0.0 }
 0x63e   : > { %v4484_v36 = vpop.xlane.xlu0 %1434 }
 0x63f   : > { %2365 = vadd.xlane.f32.xlu1 %v2364_v54  ;;  %2368 = vadd.xlane.f32.xlu0 %v2367_v40  ;;  %v1452_v20 = vrot.slane %v4484_v36, %v4049_v37  ;;  %v1456_v12 = vrot.slane %v4484_v36, %v4051_v38  ;;  %v1460_v55 = vrot.slane %v4484_v36, %v4061_v43 }
 0x640   : > { %v1464_v28 = vrot.slane %v4484_v36, %v4059_v42  ;;  %v1472_v5 = vrot.slane %v4484_v36, %v4067_v46  ;;  %v1476_v16 = vrot.slane %v4484_v36, %v4077_v51  ;;  %v1480_v25 = vrot.slane %v4484_v36, %v4075_v50 }
 0x641   : > { %v1609_v44 = vmul.f32 %v1452_v20, %v4218_v15  ;;  %v1610_v45 = vmul.f32 %v1456_v12, %v4218_v15  ;;  %v1611_v53 = vmul.f32 %v1460_v55, %v4218_v15  ;;  %v2317_v54 = vmul.f32 %v2285_v31, %v4246_v49 }
 0x642   : > { %v1612_v61 = vmul.f32 %v1464_v28, %v4218_v15  ;;  %v1614_v26 = vmul.f32 %v1472_v5, %v4218_v15  ;;  %v1615_v24 = vmul.f32 %v1476_v16, %v4218_v15  ;;  %v1616_v56 = vmul.f32 %v1480_v25, %v4218_v15 }
 0x643   : > { %2371 = vadd.xlane.f32.xlu1 %v2370_v39  ;;  %2374 = vadd.xlane.f32.xlu0 %v2373_v34  ;;  %v1641_v57 = vadd.f32 %v1609_v44, %v4227_v22  ;;  %v1642_v48 = vadd.f32 %v1610_v45, %v4227_v22  ;;  %v1643_v2 = vadd.f32 %v1611_v53, %v4227_v22  ;;  %v2379_v12 = vsel %vm1737_vm12, %v2317_v54, 0.0 }
 0x644   : > { %v1644_v29 = vadd.f32 %v1612_v61, %v4227_v22  ;;  %v1646_v33 = vadd.f32 %v1614_v26, %v4227_v22  ;;  %v1647_v32 = vadd.f32 %v1615_v24, %v4227_v22  ;;  %v1648_v20 = vadd.f32 %v1616_v56, %v4227_v22 }
 0x645   : > { %v1673_v62 = vmax.f32 %v1641_v57, 0.0  ;;  %v1674_v21 = vmax.f32 %v1642_v48, 0.0  ;;  %v1675_v8 = vmax.f32 %v1643_v2, 0.0 }
 0x646   : > { %v1676_v18 = vmax.f32 %v1644_v29, 0.0  ;;  %v1678_v40 = vmax.f32 %v1646_v33, 0.0  ;;  %v1679_v41 = vmax.f32 %v1647_v32, 0.0  ;;  %v1680_v28 = vmax.f32 %v1648_v20, 0.0 }
 0x647   : > { %2377 = vadd.xlane.f32.xlu1 %v2376_v23  ;;  %v1705_v3 = vmul.f32 %v1673_v62, %v4246_v49  ;;  %v1706_v7 = vmul.f32 %v1674_v21, %v4246_v49  ;;  %v1707_v17 = vmul.f32 %v1675_v8, %v4246_v49  ;;  %v1468_v8 = vrot.slane %v4484_v36, %v4069_v47 }
 0x648   : > { %v1708_v30 = vmul.f32 %v1676_v18, %v4246_v49  ;;  %v1710_v55 = vmul.f32 %v1678_v40, %v4246_v49  ;;  %v1711_v53 = vmul.f32 %v1679_v41, %v4246_v49  ;;  %v1712_v0 = vmul.f32 %v1680_v28, %v4246_v49 }
 0x649   : > { %v1738_v6 = vsel %vm1737_vm12, %v1705_v3, 0.0  ;;  %v1741_v14 = vsel %vm1737_vm12, %v1706_v7, 0.0  ;;  %v1744_v27 = vsel %vm1737_vm12, %v1707_v17, 0.0  ;;  %v1613_v24 = vmul.f32 %v1468_v8, %v4218_v15 }
 0x64a   : > { %1739 = vadd.xlane.f32.xlu0 %v1738_v6  ;;  %v1747_v35 = vsel %vm1737_vm12, %v1708_v30, 0.0  ;;  %v1753_v39 = vsel %vm1737_vm12, %v1710_v55, 0.0  ;;  %v1756_v48 = vsel %vm1737_vm12, %v1711_v53, 0.0  ;;  %v1759_v23 = vsel %vm1737_vm12, %v1712_v0, 0.0 }
 0x64b   : > { %v1645_v56 = vadd.f32 %v1613_v24, %v4227_v22 }
 0x64e   : > { %1742 = vadd.xlane.f32.xlu0 %v1741_v14  ;;  %v4530_v63 = vpop.xlane.xlu1 %1440 }
 0x64f   : > { %v1516_v10 = vrot.slane %v4530_v63, %v4049_v37  ;;  %v1520_v45 = vrot.slane %v4530_v63, %v4051_v38  ;;  %v1524_v57 = vrot.slane %v4530_v63, %v4061_v43  ;;  %v1528_v61 = vrot.slane %v4530_v63, %v4059_v42 }
 0x650   : > { %v1532_v3 = vrot.slane %v4530_v63, %v4069_v47  ;;  %v1536_v16 = vrot.slane %v4530_v63, %v4067_v46  ;;  %v1540_v54 = vrot.slane %v4530_v63, %v4077_v51 }
 0x651   : > { %v1625_v44 = vmul.f32 %v1516_v10, %v4218_v15  ;;  %v1626_v13 = vmul.f32 %v1520_v45, %v4218_v15  ;;  %v1627_v2 = vmul.f32 %v1524_v57, %v4218_v15  ;;  %v1628_v7 = vmul.f32 %v1528_v61, %v4218_v15 }
 0x652   : > { %1745 = vadd.xlane.f32.xlu0 %v1744_v27  ;;  %v1629_v9 = vmul.f32 %v1532_v3, %v4218_v15  ;;  %v1630_v27 = vmul.f32 %v1536_v16, %v4218_v15  ;;  %v1544_v45 = vrot.slane %v4530_v63, %v4075_v50  ;;  %v1631_v28 = vmul.f32 %v1540_v54, %v4218_v15 }
 0x653   : > { %v1657_v34 = vadd.f32 %v1625_v44, %v4227_v22  ;;  %v1658_v21 = vadd.f32 %v1626_v13, %v4227_v22  ;;  %v1659_v6 = vadd.f32 %v1627_v2, %v4227_v22  ;;  %v1660_v26 = vadd.f32 %v1628_v7, %v4227_v22 }
 0x654   : > { %v1661_v25 = vadd.f32 %v1629_v9, %v4227_v22  ;;  %v1662_v10 = vadd.f32 %v1630_v27, %v4227_v22  ;;  %v1677_v44 = vmax.f32 %v1645_v56, 0.0  ;;  %v1632_v63 = vmul.f32 %v1544_v45, %v4218_v15 }
 0x655   : > { %v1689_v62 = vmax.f32 %v1657_v34, 0.0  ;;  %v1690_v5 = vmax.f32 %v1658_v21, 0.0  ;;  %v1691_v18 = vmax.f32 %v1659_v6, 0.0  ;;  %v1692_v33 = vmax.f32 %v1660_v26, 0.0 }
 0x656   : > { %1748 = vadd.xlane.f32.xlu0 %v1747_v35  ;;  %v1693_v40 = vmax.f32 %v1661_v25, 0.0  ;;  %v1694_v34 = vmax.f32 %v1662_v10, 0.0  ;;  %v1663_v2 = vadd.f32 %v1631_v28, %v4227_v22  ;;  %v1664_v9 = vadd.f32 %v1632_v63, %v4227_v22 }
 0x657   : > { %v1721_v4 = vmul.f32 %v1689_v62, %v4246_v49  ;;  %v1722_v17 = vmul.f32 %v1690_v5, %v4246_v49  ;;  %v1723_v31 = vmul.f32 %v1691_v18, %v4246_v49  ;;  %v1724_v20 = vmul.f32 %v1692_v33, %v4246_v49 }
 0x658   : > { %2726 = vrot.lane.b32.xlu1 %v4011_v11, %s3771_s19  ;;  %v1709_v62 = vmul.f32 %v1677_v44, %v4246_v49  ;;  %v1726_v3 = vmul.f32 %v1694_v34, %v4246_v49  ;;  %s3399_s19 = sshll.u32 %s3837_s28, 7  ;;  %s3683_s28 = scalar_lea.vmem %s4989_s29, 128 }
 0x659   : > { %v1786_v14 = vsel %vm1737_vm12, %v1721_v4, 0.0  ;;  %v1789_v30 = vsel %vm1737_vm12, %v1722_v17, 0.0  ;;  %v1792_v41 = vsel %vm1737_vm12, %v1723_v31, 0.0  ;;  %v1795_v13 = vsel %vm1737_vm12, %v1724_v20, 0.0  ;;  %s4987_s20 = scalar_lea.hbm %s5039_s7, %s3399_s19  ;;  %p3684_p11 = scmp.ne.s32.totalorder %s4989_s29, %s3683_s28 }
 0x65a   : > { %2380 = vadd.xlane.f32.xlu0 %v2379_v12  ;;  %v1750_v8 = vsel %vm1737_vm12, %v1709_v62, 0.0  ;;  %v1801_v26 = vsel %vm1737_vm12, %v1726_v3, 0.0  ;;  %v1696_v31 = vmax.f32 %v1664_v9, 0.0 }
 0x65b   : > { %p3685_p1 = pnand %p3684_p11, %p5053_p0 }
 0x65d   : > { %p3686_p3 = pneg %p3685_p1 }
 0x65e   : > { %1754 = vadd.xlane.f32.xlu0 %v1753_v39  ;;  %v4565_v29 = vpop.xlane.xlu0 %1443  ;;  %v1725_v39 = vmul.f32 %v1693_v40, %v4246_v49 }
 0x65f   : > { %v1548_v36 = vrot.slane %v4565_v29, %v4049_v37  ;;  %v1552_v32 = vrot.slane %v4565_v29, %v4051_v38  ;;  %v1556_v55 = vrot.slane %v4565_v29, %v4061_v43  ;;  %v1560_v0 = vrot.slane %v4565_v29, %v4059_v42 }
 0x660   : > { %v1564_v61 = vrot.slane %v4565_v29, %v4069_v47  ;;  %v1568_v7 = vrot.slane %v4565_v29, %v4067_v46  ;;  %v1572_v18 = vrot.slane %v4565_v29, %v4077_v51  ;;  %v1576_v24 = vrot.slane %v4565_v29, %v4075_v50  ;;  %v4635_v29 = vld [vmem:[%s5038_s6 + $0x1] sm:$0x1] }
 0x661   : > { %v1633_v35 = vmul.f32 %v1548_v36, %v4218_v15  ;;  %v1634_v12 = vmul.f32 %v1552_v32, %v4218_v15  ;;  %v1636_v6 = vmul.f32 %v1560_v0, %v4218_v15 }
 0x662   : > { %1757 = vadd.xlane.f32.xlu0 %v1756_v48  ;;  %v1635_v48 = vmul.f32 %v1556_v55, %v4218_v15  ;;  %v1637_v17 = vmul.f32 %v1564_v61, %v4218_v15 }
 0x663   : > { %v1665_v53 = vadd.f32 %v1633_v35, %v4227_v22  ;;  %v1666_v57 = vadd.f32 %v1634_v12, %v4227_v22  ;;  %v1668_v27 = vadd.f32 %v1636_v6, %v4227_v22  ;;  %v1728_v12 = vmul.f32 %v1696_v31, %v4246_v49 }
 0x664   : > { %v1667_v5 = vadd.f32 %v1635_v48, %v4227_v22  ;;  %v1669_v22 = vadd.f32 %v4635_v29, %v1637_v17 }
 0x665   : > { %v1697_v21 = vmax.f32 %v1665_v53, 0.0  ;;  %v1698_v4 = vmax.f32 %v1666_v57, 0.0  ;;  %v1700_v10 = vmax.f32 %v1668_v27, 0.0  ;;  %v4650_v53 = vld [vmem:[%s5038_s6 + $0x2] sm:$0x1] }
 0x666   : > { %1760 = vadd.xlane.f32.xlu0 %v1759_v23  ;;  %v1798_v23 = vsel %vm1737_vm12, %v1725_v39, 0.0  ;;  %v1699_v25 = vmax.f32 %v1667_v5, 0.0  ;;  %v1701_v55 = vmax.f32 %v1669_v22, 0.0 }
 0x667   : > { %v1729_v16 = vmul.f32 %v1697_v21, %v4246_v49  ;;  %v1730_v36 = vmul.f32 %v1698_v4, %v4246_v49  ;;  %v1732_v28 = vmul.f32 %v4650_v53, %v1700_v10 }
 0x668   : > { %v1731_v40 = vmul.f32 %v1699_v25, %v4246_v49 }
 0x669   : > { %v1810_v33 = vsel %vm1737_vm12, %v1729_v16, 0.0  ;;  %v1813_v54 = vsel %vm1737_vm12, %v1730_v36, 0.0  ;;  %v1819_v48 = vsel %vm1737_vm12, %v1732_v28, 0.0 }
 0x66a   : > { %1787 = vadd.xlane.f32.xlu0 %v1786_v14  ;;  %v1695_v14 = vmax.f32 %v1663_v2, 0.0  ;;  %v1816_v45 = vsel %vm1737_vm12, %v1731_v40, 0.0 }
 0x66c   : > { %v1727_v32 = vmul.f32 %v1695_v14, %v4246_v49  ;;  %v1733_v49 = vmul.f32 %v4650_v53, %v1701_v55 }
 0x66e   : > { %1790 = vadd.xlane.f32.xlu0 %v1789_v30  ;;  %v4627_v30 = vld [vmem:[%s5038_s6] sm:$0x1]  ;;  %v1804_v20 = vsel %vm1737_vm12, %v1727_v32, 0.0  ;;  %v1822_v63 = vsel %vm1737_vm12, %v1733_v49, 0.0 }
 0x66f   : > { %v1638_v15 = vmul.f32 %v4627_v30, %v1568_v7  ;;  %v1639_v56 = vmul.f32 %v4627_v30, %v1572_v18  ;;  %v1640_v35 = vmul.f32 %v4627_v30, %v1576_v24 }
 0x671   : > { %v1671_v44 = vadd.f32 %v4635_v29, %v1639_v56  ;;  %v1672_v34 = vadd.f32 %v4635_v29, %v1640_v35 }
 0x672   : > { %1793 = vadd.xlane.f32.xlu0 %v1792_v41  ;;  %v1670_v41 = vadd.f32 %v4635_v29, %v1638_v15 }
 0x673   : > { %v1703_v57 = vmax.f32 %v1671_v44, 0.0  ;;  %v1704_v62 = vmax.f32 %v1672_v34, 0.0 }
 0x674   : > { %v1702_v39 = vmax.f32 %v1670_v41, 0.0 }
 0x675   : > { %v1735_v21 = vmul.f32 %v4650_v53, %v1703_v57  ;;  %v1736_v61 = vmul.f32 %v4650_v53, %v1704_v62 }
 0x676   : > { %1796 = vadd.xlane.f32.xlu0 %v1795_v13  ;;  %v1807_v13 = vsel %vm1737_vm12, %v1728_v12, 0.0  ;;  %v1734_v0 = vmul.f32 %v4650_v53, %v1702_v39 }
 0x677   : > { %v1831_v3 = vsel %vm1737_vm12, %v1736_v61, 0.0 }
 0x678   : > { %v1825_v2 = vsel %vm1737_vm12, %v1734_v0, 0.0 }
 0x67a   : > { %1799 = vadd.xlane.f32.xlu0 %v1798_v23  ;;  %v1828_v23 = vsel %vm1737_vm12, %v1735_v21, 0.0 }
 0x67c   : > { %1751 = vadd.xlane.f32.xlu1 %v1750_v8 }
 0x67e   : > { %1802 = vadd.xlane.f32.xlu0 %v1801_v26 }
 0x680   : > { %1811 = vadd.xlane.f32.xlu1 %v1810_v33 }
 0x682   : > { %1814 = vadd.xlane.f32.xlu0 %v1813_v54 }
 0x684   : > { %1805 = vadd.xlane.f32.xlu1 %v1804_v20 }
 0x686   : > { %1817 = vadd.xlane.f32.xlu0 %v1816_v45 }
 0x688   : > { %1808 = vadd.xlane.f32.xlu1 %v1807_v13 }
 0x68a   : > { %1820 = vadd.xlane.f32.xlu0 %v1819_v48 }
 0x68c   : > { %1823 = vadd.xlane.f32.xlu1 %v1822_v63 }
 0x68e   : > { %1826 = vadd.xlane.f32.xlu0 %v1825_v2 }
 0x690   : > { %1829 = vadd.xlane.f32.xlu1 %v1828_v23 }
 0x692   : > { %1832 = vadd.xlane.f32.xlu0 %v1831_v3 }
 0x6c8   : > { %v2360_v4 = vpop.xlane.xlu1 %2359  ;;  %v2363_v5 = vpop.xlane.xlu0 %2362 }
 0x6c9   : > { %v2469_v26 = vrot.slane %v2360_v4, %v4049_v37  ;;  %v2473_v24 = vrot.slane %v2363_v5, %v4049_v37 }
 0x6cb   : > { %v2601_v27 = vsel %vm1390_vm4, %v2473_v24, %v2469_v26 }
 0x6cc   : > { %v2366_v6 = vpop.xlane.xlu1 %2365  ;;  %v2369_v7 = vpop.xlane.xlu0 %2368 }
 0x6cd   : > { %v2477_v36 = vrot.slane %v2366_v6, %v4049_v37  ;;  %v2481_v15 = vrot.slane %v2369_v7, %v4049_v37 }
 0x6cf   : > { %v2602_v31 = vsel %vm1392_vm5, %v2477_v36, %v2601_v27 }
 0x6d0   : > { %v2372_v8 = vpop.xlane.xlu1 %2371  ;;  %v2375_v9 = vpop.xlane.xlu0 %2374  ;;  %v2603_v22 = vsel %vm1394_vm6, %v2481_v15, %v2602_v31 }
 0x6d1   : > { %v2485_v33 = vrot.slane %v2372_v8, %v4049_v37  ;;  %v2489_v56 = vrot.slane %v2375_v9, %v4049_v37 }
 0x6d3   : > { %v2604_v35 = vsel %vm1396_vm7, %v2485_v33, %v2603_v22 }
 0x6d4   : > { %v2378_v16 = vpop.xlane.xlu1 %2377  ;;  %v2605_v10 = vsel %vm1398_vm8, %v2489_v56, %v2604_v35 }
 0x6d5   : > { %v2493_v54 = vrot.slane %v2378_v16, %v4049_v37 }
 0x6d7   : > { %v1740_v14 = vpop.xlane.xlu0 %1739  ;;  %v2606_v20 = vsel %vm1400_vm9, %v2493_v54, %v2605_v10 }
 0x6d8   : > { %v2727_v17 = vpop.permute.xlu1 %2726  ;;  %v1837_v60 = vrot.slane %v1740_v14, %v4049_v37 }
 0x6d9   : > { %3468 = vmatpush3.msra.mxu1 %v2727_v17 }
 0x6da   : > { %3477 = vmatprep.subr.mxu1 %v3762_v1 }
 0x6db   : > { %v1743_v18 = vpop.xlane.xlu0 %1742 }
 0x6dc   : > { %v1841_v0 = vrot.slane %v1743_v18, %v4049_v37 }
 0x6de   : > { %v1994_v21 = vsel %vm1390_vm4, %v1841_v0, %v1837_v60 }
 0x6df   : > { %v1746_v25 = vpop.xlane.xlu0 %1745 }
 0x6e0   : > { %v1845_v62 = vrot.slane %v1746_v25, %v4049_v37 }
 0x6e2   : > { %v1995_v61 = vsel %vm1392_vm5, %v1845_v62, %v1994_v21 }
 0x6e3   : > { %v1749_v32 = vpop.xlane.xlu0 %1748 }
 0x6e7   : > { %v2381_v40 = vpop.xlane.xlu0 %2380 }
 0x6e8   : > { %v2497_v41 = vrot.slane %v2381_v40, %v4049_v37 }
 0x6ea   : > { %v2607_v12 = vsel %vm1402_vm10, %v2497_v41, %v2606_v20 }
 0x6eb   : > { %v2627_v55 = vmul.f32 %v2607_v12, %v4384_v19  ;;  %v1755_v44 = vpop.xlane.xlu0 %1754 }
 0x6ec   : > { %v1857_v4 = vrot.slane %v1755_v44, %v4049_v37 }
 0x6ed   : > { %v2639_v45 = vsel %vm2431_vm3, %v2627_v55, %v4384_v19  ;;  %v1849_v19 = vrot.slane %v1749_v32, %v4049_v37 }
 0x6ee   : > { %v2643_v28 = vmax.f32 %v2639_v45, 0.0 }
 0x6ef   : > { %v1758_v39 = vpop.xlane.xlu0 %1757  ;;  %v1996_v3 = vsel %vm1394_vm6, %v1849_v19, %v1995_v61 }
 0x6f0   : > { %3470 = vmatmul.mubr.msk.f32.vlgmr.msra.gmra.mrb[6].mxu1 %vm412_vm2, %v2643_v28  ;;  %v1861_v6 = vrot.slane %v1758_v39, %v4049_v37 }
 0x6f1   : > { %3479 = vmatprep.mubr.msk.f32.mxu1 %vm3761_vm0, %v3762_v1 }
 0x6f3   : > { %v1761_v34 = vpop.xlane.xlu0 %1760 }
 0x6f4   : > { %v1865_v8 = vrot.slane %v1761_v34, %v4049_v37 }
 0x6f7   : > { %v1788_v13 = vpop.xlane.xlu0 %1787 }
 0x6f8   : > { %v1901_v36 = vrot.slane %v1788_v13, %v4049_v37 }
 0x6fb   : > { %v1791_v49 = vpop.xlane.xlu0 %1790 }
 0x6fc   : > { %v1905_v14 = vrot.slane %v1791_v49, %v4049_v37 }
 0x6fe   : > { %v2008_v33 = vsel %vm1390_vm4, %v1905_v14, %v1901_v36 }
 0x6ff   : > { %v1794_v57 = vpop.xlane.xlu0 %1793 }
 0x700   : > { %v1909_v18 = vrot.slane %v1794_v57, %v4049_v37 }
 0x702   : > { %v2009_v56 = vsel %vm1392_vm5, %v1909_v18, %v2008_v33 }
 0x703   : > { %v1797_v48 = vpop.xlane.xlu0 %1796 }
 0x704   : > { %v1913_v25 = vrot.slane %v1797_v48, %v4049_v37 }
 0x706   : > { %v2010_v40 = vsel %vm1394_vm6, %v1913_v25, %v2009_v56 }
 0x707   : > { %v1800_v63 = vpop.xlane.xlu0 %1799 }
 0x708   : > { %v1917_v15 = vrot.slane %v1800_v63, %v4049_v37 }
 0x709   : > { %v1752_v2 = vpop.xlane.xlu1 %1751 }
 0x70a   : > { %v1853_v23 = vrot.slane %v1752_v2, %v4049_v37  ;;  %v2011_v10 = vsel %vm1396_vm7, %v1917_v15, %v2010_v40 }
 0x70b   : > { %v1803_v5 = vpop.xlane.xlu0 %1802 }
 0x70c   : > { %v1997_v7 = vsel %vm1396_vm7, %v1853_v23, %v1996_v3  ;;  %v1921_v32 = vrot.slane %v1803_v5, %v4049_v37 }
 0x70d   : > { %v1998_v9 = vsel %vm1398_vm8, %v1857_v4, %v1997_v7  ;;  %v1812_v16 = vpop.xlane.xlu1 %1811 }
 0x70e   : > { %v1999_v17 = vsel %vm1400_vm9, %v1861_v6, %v1998_v9  ;;  %v2012_v12 = vsel %vm1398_vm8, %v1921_v32, %v2011_v10  ;;  %v1933_v55 = vrot.slane %v1812_v16, %v4049_v37 }
 0x70f   : > { %v1815_v26 = vpop.xlane.xlu0 %1814  ;;  %v2000_v24 = vsel %vm1402_vm10, %v1865_v8, %v1999_v17 }
 0x710   : > { %v4706_v27 = vmul.f32 %v2000_v24, %v4404_v59  ;;  %v1937_v59 = vrot.slane %v1815_v26, %v4049_v37 }
 0x711   : > { %v1806_v31 = vpop.xlane.xlu1 %1805 }
 0x712   : > { %v2030_v22 = vsel %vm412_vm2, %v4706_v27, 0.0  ;;  %v1925_v35 = vrot.slane %v1806_v31, %v4049_v37  ;;  %v2015_v39 = vsel %vm1390_vm4, %v1937_v59, %v1933_v55 }
 0x713   : > { %2031 = vadd.xlane.f32.xlu1 %v2030_v22  ;;  %v1818_v54 = vpop.xlane.xlu0 %1817 }
 0x714   : > { %v1941_v41 = vrot.slane %v1818_v54, %v4049_v37  ;;  %v2013_v45 = vsel %vm1400_vm9, %v1925_v35, %v2012_v12 }
 0x715   : > { %v1809_v20 = vpop.xlane.xlu1 %1808 }
 0x716   : > { %v1929_v44 = vrot.slane %v1809_v20, %v4049_v37  ;;  %v2016_v49 = vsel %vm1392_vm5, %v1941_v41, %v2015_v39 }
 0x717   : > { %v1821_v28 = vpop.xlane.xlu0 %1820 }
 0x718   : > { %v2014_v34 = vsel %vm1402_vm10, %v1929_v44, %v2013_v45  ;;  %v1945_v13 = vrot.slane %v1821_v28, %v4049_v37 }
 0x719   : > { %v4728_v57 = vmul.f32 %v2014_v34, %v4424_v52  ;;  %v1824_v48 = vpop.xlane.xlu1 %1823 }
 0x71a   : > { %v2017_v0 = vsel %vm1394_vm6, %v1945_v13, %v2016_v49  ;;  %v1949_v62 = vrot.slane %v1824_v48, %v4049_v37 }
 0x71b   : > { %v1827_v60 = vpop.xlane.xlu0 %1826  ;;  %v2036_v19 = vsel %vm412_vm2, %v4728_v57, 0.0 }
 0x71c   : > { %v2018_v63 = vsel %vm1396_vm7, %v1949_v62, %v2017_v0  ;;  %v1953_v21 = vrot.slane %v1827_v60, %v4049_v37  ;;  %2037 = vadd.xlane.f32.xlu0 %v2036_v19 }
 0x71d   : > { %v1830_v2 = vpop.xlane.xlu1 %1829 }
 0x71e   : > { %v2019_v61 = vsel %vm1398_vm8, %v1953_v21, %v2018_v63  ;;  %v1957_v52 = vrot.slane %v1830_v2, %v4049_v37 }
 0x71f   : > { %v1833_v23 = vpop.xlane.xlu0 %1832 }
 0x720   : > { %v2020_v3 = vsel %vm1400_vm9, %v1957_v52, %v2019_v61  ;;  %v1961_v4 = vrot.slane %v1833_v23, %v4049_v37 }
 0x722   : > { %v2021_v5 = vsel %vm1402_vm10, %v1961_v4, %v2020_v3 }
 0x723   : > { %v4742_v6 = vmul.f32 %v2021_v5, %v4444_v58 }
 0x725   : > { %v2039_v7 = vsel %vm412_vm2, %v4742_v6, 0.0 }
 0x726   : > { %2040 = vadd.xlane.f32.xlu1 %v2039_v7 }
 0x7a0   : > { %v4746_v8 = vpop.xlane.xlu1 %2031 }
 0x7a1   : > { %v2049_v9 = vrot.slane %v4746_v8, %v4049_v37  ;;  %v2053_v16 = vrot.slane %v4746_v8, %v4051_v38  ;;  %v2057_v14 = vrot.slane %v4746_v8, %v4061_v43  ;;  %v2061_v17 = vrot.slane %v4746_v8, %v4059_v42 }
 0x7a2   : > { %v2065_v58 = vrot.slane %v4746_v8, %v4069_v47  ;;  %v2069_v18 = vrot.slane %v4746_v8, %v4067_v46  ;;  %v2073_v26 = vrot.slane %v4746_v8, %v4077_v51  ;;  %v2077_v24 = vrot.slane %v4746_v8, %v4075_v50 }
 0x7a3   : > { %v2206_v36 = vmul.f32 %v4627_v30, %v2049_v9  ;;  %v2207_v25 = vmul.f32 %v4627_v30, %v2053_v16  ;;  %v2208_v15 = vmul.f32 %v4627_v30, %v2057_v14  ;;  %v2209_v31 = vmul.f32 %v4627_v30, %v2061_v17 }
 0x7a4   : > { %v2210_v33 = vmul.f32 %v4627_v30, %v2065_v58  ;;  %v2211_v32 = vmul.f32 %v4627_v30, %v2069_v18  ;;  %v2212_v22 = vmul.f32 %v4627_v30, %v2073_v26  ;;  %v2213_v56 = vmul.f32 %v4627_v30, %v2077_v24 }
 0x7a5   : > { %v2238_v35 = vadd.f32 %v4635_v29, %v2206_v36  ;;  %v2239_v54 = vadd.f32 %v4635_v29, %v2207_v25  ;;  %v2240_v40 = vadd.f32 %v4635_v29, %v2208_v15  ;;  %v2241_v59 = vadd.f32 %v4635_v29, %v2209_v31 }
 0x7a6   : > { %v2242_v10 = vadd.f32 %v4635_v29, %v2210_v33  ;;  %v2243_v41 = vadd.f32 %v4635_v29, %v2211_v32  ;;  %v2244_v39 = vadd.f32 %v4635_v29, %v2212_v22  ;;  %v2245_v34 = vadd.f32 %v4635_v29, %v2213_v56 }
 0x7a7   : > { %v2270_v20 = vmax.f32 %v2238_v35, 0.0  ;;  %v2271_v12 = vmax.f32 %v2239_v54, 0.0  ;;  %v2272_v55 = vmax.f32 %v2240_v40, 0.0  ;;  %v2273_v44 = vmax.f32 %v2241_v59, 0.0 }
 0x7a8   : > { %v2274_v45 = vmax.f32 %v2242_v10, 0.0  ;;  %v2275_v28 = vmax.f32 %v2243_v41, 0.0  ;;  %v2276_v2 = vmax.f32 %v2244_v39, 0.0  ;;  %v2277_v61 = vmax.f32 %v2245_v34, 0.0 }
 0x7a9   : > { %v2302_v13 = vmul.f32 %v4650_v53, %v2270_v20  ;;  %v2303_v49 = vmul.f32 %v4650_v53, %v2271_v12  ;;  %v4782_v48 = vpop.xlane.xlu0 %2037  ;;  %v2304_v0 = vmul.f32 %v4650_v53, %v2272_v55  ;;  %v2305_v62 = vmul.f32 %v4650_v53, %v2273_v44 }
 0x7aa   : > { %v2306_v63 = vmul.f32 %v4650_v53, %v2274_v45  ;;  %v2307_v21 = vmul.f32 %v4650_v53, %v2275_v28  ;;  %v2117_v52 = vrot.slane %v4782_v48, %v4051_v38  ;;  %v2113_v23 = vrot.slane %v4782_v48, %v4049_v37 }
 0x7ab   : > { %v2334_v60 = vsel %vm1737_vm12, %v2302_v13, 0.0  ;;  %v2337_v19 = vsel %vm1737_vm12, %v2303_v49, 0.0  ;;  %v2125_v3 = vrot.slane %v4782_v48, %v4059_v42  ;;  %v2121_v4 = vrot.slane %v4782_v48, %v4061_v43 }
 0x7ac   : > { %2335 = vadd.xlane.f32.xlu0 %v2334_v60  ;;  %2338 = vadd.xlane.f32.xlu1 %v2337_v19  ;;  %v2340_v5 = vsel %vm1737_vm12, %v2304_v0, 0.0  ;;  %v2343_v7 = vsel %vm1737_vm12, %v2305_v62, 0.0  ;;  %v2133_v9 = vrot.slane %v4782_v48, %v4067_v46  ;;  %v2129_v16 = vrot.slane %v4782_v48, %v4069_v47 }
 0x7ad   : > { %v2223_v14 = vmul.f32 %v4627_v30, %v2117_v52  ;;  %v2222_v17 = vmul.f32 %v4627_v30, %v2113_v23  ;;  %v2225_v58 = vmul.f32 %v4627_v30, %v2125_v3  ;;  %v2224_v18 = vmul.f32 %v4627_v30, %v2121_v4 }
 0x7ae   : > { %v2227_v26 = vmul.f32 %v4627_v30, %v2133_v9  ;;  %v2137_v24 = vrot.slane %v4782_v48, %v4077_v51  ;;  %v2226_v31 = vmul.f32 %v4627_v30, %v2129_v16  ;;  %v2308_v33 = vmul.f32 %v4650_v53, %v2276_v2 }
 0x7af   : > { %v2255_v36 = vadd.f32 %v4635_v29, %v2223_v14  ;;  %v2254_v25 = vadd.f32 %v4635_v29, %v2222_v17  ;;  %v2257_v15 = vadd.f32 %v4635_v29, %v2225_v58  ;;  %v2309_v32 = vmul.f32 %v4650_v53, %v2277_v61 }
 0x7b0   : > { %2341 = vadd.xlane.f32.xlu0 %v2340_v5  ;;  %2344 = vadd.xlane.f32.xlu1 %v2343_v7  ;;  %v2256_v22 = vadd.f32 %v4635_v29, %v2224_v18  ;;  %v2346_v35 = vsel %vm1737_vm12, %v2306_v63, 0.0  ;;  %v2349_v54 = vsel %vm1737_vm12, %v2307_v21, 0.0  ;;  %v2228_v41 = vmul.f32 %v4627_v30, %v2137_v24 }
 0x7b1   : > { %v2287_v40 = vmax.f32 %v2255_v36, 0.0  ;;  %v2286_v59 = vmax.f32 %v2254_v25, 0.0  ;;  %v2289_v20 = vmax.f32 %v2257_v15, 0.0  ;;  %v2259_v12 = vadd.f32 %v4635_v29, %v2227_v26 }
 0x7b2   : > { %v2258_v55 = vadd.f32 %v4635_v29, %v2226_v31  ;;  %v2288_v45 = vmax.f32 %v2256_v22, 0.0  ;;  %v2141_v39 = vrot.slane %v4782_v48, %v4075_v50  ;;  %v2352_v34 = vsel %vm1737_vm12, %v2308_v33, 0.0 }
 0x7b3   : > { %v4818_v56 = vpop.xlane.xlu1 %2040  ;;  %v2319_v44 = vmul.f32 %v4650_v53, %v2287_v40  ;;  %v2355_v13 = vsel %vm1737_vm12, %v2309_v32, 0.0  ;;  %v2260_v49 = vadd.f32 %v4635_v29, %v2228_v41  ;;  %v2321_v0 = vmul.f32 %v4650_v53, %v2289_v20 }
 0x7b4   : > { %2347 = vadd.xlane.f32.xlu0 %v2346_v35  ;;  %2350 = vadd.xlane.f32.xlu1 %v2349_v54  ;;  %v2149_v10 = vrot.slane %v4818_v56, %v4051_v38  ;;  %v2318_v38 = vmul.f32 %v4650_v53, %v2286_v59  ;;  %v2291_v62 = vmax.f32 %v2259_v12, 0.0  ;;  %v2290_v60 = vmax.f32 %v2258_v55, 0.0 }
 0x7b5   : > { %v2153_v19 = vrot.slane %v4818_v56, %v4061_v43  ;;  %v2385_v63 = vsel %vm1737_vm12, %v2319_v44, 0.0  ;;  %v2320_v21 = vmul.f32 %v4650_v53, %v2288_v45  ;;  %v2229_v61 = vmul.f32 %v4627_v30, %v2141_v39 }
 0x7b6   : > { %v2231_v28 = vmul.f32 %v4627_v30, %v2149_v10  ;;  %v2382_v52 = vsel %vm1737_vm12, %v2318_v38, 0.0  ;;  %v2157_v3 = vrot.slane %v4818_v56, %v4059_v42  ;;  %v2145_v4 = vrot.slane %v4818_v56, %v4049_v37 }
 0x7b7   : > { %v2232_v23 = vmul.f32 %v4627_v30, %v2153_v19  ;;  %v2391_v43 = vsel %vm1737_vm12, %v2321_v0, 0.0  ;;  %v2323_v5 = vmul.f32 %v4650_v53, %v2291_v62  ;;  %v2322_v7 = vmul.f32 %v4650_v53, %v2290_v60 }
 0x7b8   : > { %2353 = vadd.xlane.f32.xlu0 %v2352_v34  ;;  %2356 = vadd.xlane.f32.xlu1 %v2355_v13  ;;  %v2263_v2 = vadd.f32 %v4635_v29, %v2231_v28  ;;  %v2292_v9 = vmax.f32 %v2260_v49, 0.0  ;;  %v2261_v14 = vadd.f32 %v4635_v29, %v2229_v61  ;;  %v2165_v17 = vrot.slane %v4818_v56, %v4067_v46 }
 0x7b9   : > { %v2161_v42 = vrot.slane %v4818_v56, %v4069_v47  ;;  %v2388_v58 = vsel %vm1737_vm12, %v2320_v21, 0.0  ;;  %v2264_v18 = vadd.f32 %v4635_v29, %v2232_v23  ;;  %v2233_v26 = vmul.f32 %v4627_v30, %v2157_v3 }
 0x7ba   : > { %v2295_v16 = vmax.f32 %v2263_v2, 0.0  ;;  %v2230_v24 = vmul.f32 %v4627_v30, %v2145_v4  ;;  %v2397_v36 = vsel %vm1737_vm12, %v2323_v5, 0.0  ;;  %v2394_v25 = vsel %vm1737_vm12, %v2322_v7, 0.0 }
 0x7bb   : > { %v2324_v15 = vmul.f32 %v4650_v53, %v2292_v9  ;;  %v2293_v31 = vmax.f32 %v2261_v14, 0.0  ;;  %v2235_v47 = vmul.f32 %v4627_v30, %v2165_v17  ;;  %v2234_v33 = vmul.f32 %v4627_v30, %v2161_v42 }
 0x7bc   : > { %2386 = vadd.xlane.f32.xlu1 %v2385_v63  ;;  %2383 = vadd.xlane.f32.xlu0 %v2382_v52  ;;  %v2327_v46 = vmul.f32 %v4650_v53, %v2295_v16  ;;  %v2296_v22 = vmax.f32 %v2264_v18, 0.0  ;;  %v2265_v35 = vadd.f32 %v4635_v29, %v2233_v26  ;;  %v2262_v54 = vadd.f32 %v4635_v29, %v2230_v24 }
 0x7bd   : > { %v2169_v40 = vrot.slane %v4818_v56, %v4077_v51  ;;  %v2400_v10 = vsel %vm1737_vm12, %v2324_v15, 0.0  ;;  %v2325_v20 = vmul.f32 %v4650_v53, %v2293_v31  ;;  %v2267_v12 = vadd.f32 %v4635_v29, %v2235_v47 }
 0x7be   : > { %v2409_v41 = vsel %vm1737_vm12, %v2327_v46, 0.0  ;;  %v2266_v55 = vadd.f32 %v4635_v29, %v2234_v33  ;;  %v2328_v44 = vmul.f32 %v4650_v53, %v2296_v22  ;;  %v2297_v45 = vmax.f32 %v2265_v35, 0.0 }
 0x7bf   : > { %v2294_v28 = vmax.f32 %v2262_v54, 0.0  ;;  %v2236_v39 = vmul.f32 %v4627_v30, %v2169_v40  ;;  %v2403_v51 = vsel %vm1737_vm12, %v2325_v20, 0.0  ;;  %v2299_v34 = vmax.f32 %v2267_v12, 0.0 }
 0x7c0   : > { %2392 = vadd.xlane.f32.xlu1 %v2391_v43  ;;  %2389 = vadd.xlane.f32.xlu0 %v2388_v58  ;;  %v2298_v13 = vmax.f32 %v2266_v55, 0.0  ;;  %v2412_v38 = vsel %vm1737_vm12, %v2328_v44, 0.0  ;;  %v2329_v49 = vmul.f32 %v4650_v53, %v2297_v45  ;;  %v2173_v4 = vrot.slane %v4818_v56, %v4075_v50 }
 0x7c1   : > { %v2326_v0 = vmul.f32 %v4650_v53, %v2294_v28  ;;  %v2268_v62 = vadd.f32 %v4635_v29, %v2236_v39  ;;  %v2331_v60 = vmul.f32 %v4650_v53, %v2299_v34  ;;  %vm2430_vm11 = vcmp.gt.f32.partialorder %v4746_v8, 1.5 }
 0x7c2   : > { %v2415_v19 = vsel %vm1737_vm12, %v2329_v49, 0.0  ;;  %v2330_v21 = vmul.f32 %v4650_v53, %v2298_v13  ;;  %v2237_v43 = vmul.f32 %v4627_v30, %v2173_v4 }
 0x7c3   : > { %v4866_v32 = vpop.f32.mrb[6].mxu1  ;;  %v2406_v63 = vsel %vm1737_vm12, %v2326_v0, 0.0  ;;  %v2300_v2 = vmax.f32 %v2268_v62, 0.0  ;;  %v2421_v61 = vsel %vm1737_vm12, %v2331_v60, 0.0 }
 0x7c4   : > { %v3471_v59 = vpop.f32.mrb[7].mxu1  ;;  %2398 = vadd.xlane.f32.xlu1 %v2397_v36  ;;  %2395 = vadd.xlane.f32.xlu0 %v2394_v25  ;;  %v2418_v52 = vsel %vm1737_vm12, %v2330_v21, 0.0  ;;  %v2269_v5 = vadd.f32 %v4635_v29, %v2237_v43 }
 0x7c5   : > { %v2332_v23 = vmul.f32 %v4650_v53, %v2300_v2 }
 0x7c6   : > { %v2301_v7 = vmax.f32 %v2269_v5, 0.0 }
 0x7c7   : > { %v2424_v3 = vsel %vm1737_vm12, %v2332_v23, 0.0 }
 0x7c8   : > { %2410 = vadd.xlane.f32.xlu1 %v2409_v41  ;;  %2401 = vadd.xlane.f32.xlu0 %v2400_v10  ;;  %v2333_v9 = vmul.f32 %v4650_v53, %v2301_v7 }
 0x7ca   : > { %v2427_v16 = vsel %vm1737_vm12, %v2333_v9, 0.0  ;;  %vm2432_vm12 = vcmp.gt.f32.partialorder %v4782_v48, 1.5 }
 0x7cc   : > { %2413 = vadd.xlane.f32.xlu1 %v2412_v38  ;;  %2404 = vadd.xlane.f32.xlu0 %v2403_v51 }
 0x7d0   : > { %2416 = vadd.xlane.f32.xlu1 %v2415_v19  ;;  %2407 = vadd.xlane.f32.xlu0 %v2406_v63 }
 0x7d4   : > { %2422 = vadd.xlane.f32.xlu1 %v2421_v61  ;;  %2419 = vadd.xlane.f32.xlu0 %v2418_v52 }
 0x7d8   : > { %2425 = vadd.xlane.f32.xlu0 %v2424_v3 }
 0x7e5   : > { %2948 = vrot.lane.b32.xlu1 %v4011_v11, %s3772_s22  ;;  %s3687_s22 = sshll.u32 %s3775_s14, 4  ;;  %s3688_s22 = int_to_ptr.vmem [resolvable:$false] %s3687_s22 }
 0x7e6   : > { %p3690_p7 = scmp.lt.s32.totalorder %s4989_s29, %s3688_s22 }
 0x7ee   : > { %2650 = vrot.lane.b32.xlu0 %v4011_v11, %s3773_s10  ;;  %s3689_s10 = scalar_lea.vmem %s3688_s22, 256 }
 0x7ef   : > { %p3691_p9 = scmp.lt.s32.totalorder %s3689_s10, %s3683_s28 }
 0x7f1   : > { %p3692_p12 = por %p3691_p9, %p3690_p7 }
 0x7f3   : > { %p3693_p2 = pnand %p3692_p12, %p3686_p3 }
 0x809   : > { %2428 = vadd.xlane.f32.xlu1 %v2427_v16 }
 0x81a   : > { %3098 = vrot.lane.b32.xlu1 %v4011_v11, %s3774_s18 }
 0x839   : > { %v2339_v14 = vpop.xlane.xlu1 %2338  ;;  %v2336_v17 = vpop.xlane.xlu0 %2335 }
 0x83a   : > { %v2441_v53 = vrot.slane %v2339_v14, %v4049_v37  ;;  %v2437_v15 = vrot.slane %v2336_v17, %v4049_v37 }
 0x83c   : > { %v2594_v47 = vsel %vm1390_vm4, %v2441_v53, %v2437_v15 }
 0x83d   : > { %v2345_v42 = vpop.xlane.xlu1 %2344  ;;  %v2342_v58 = vpop.xlane.xlu0 %2341 }
 0x83e   : > { %v2445_v46 = vrot.slane %v2342_v58, %v4049_v37  ;;  %v2449_v33 = vrot.slane %v2345_v42, %v4049_v37  ;;  %v2647_v42 = vld [vmem:[#allocation7 + $0x8] sm:$0xff] }
 0x840   : > { %v2595_v22 = vsel %vm1392_vm5, %v2445_v46, %v2594_v47 }
 0x841   : > { %v2351_v18 = vpop.xlane.xlu1 %2350  ;;  %v2348_v26 = vpop.xlane.xlu0 %2347  ;;  %v2596_v59 = vsel %vm1394_vm6, %v2449_v33, %v2595_v22 }
 0x842   : > { %v2453_v35 = vrot.slane %v2348_v26, %v4049_v37  ;;  %v2457_v40 = vrot.slane %v2351_v18, %v4049_v37 }
 0x844   : > { %v2597_v41 = vsel %vm1396_vm7, %v2453_v35, %v2596_v59 }
 0x845   : > { %v2357_v50 = vpop.xlane.xlu1 %2356  ;;  %v2354_v24 = vpop.xlane.xlu0 %2353  ;;  %v2598_v39 = vsel %vm1398_vm8, %v2457_v40, %v2597_v41  ;;  %v2646_v40 = vld [vmem:[#allocation7] sm:$0xff]  ;;  %v2649_v41 = vld [vmem:[#allocation7 + $0x18] sm:$0xff] }
 0x846   : > { %v2461_v20 = vrot.slane %v2354_v24, %v4049_v37  ;;  %v2465_v28 = vrot.slane %v2357_v50, %v4049_v37  ;;  %3478 = vmatpush3.msra.mxu1 %v2646_v40 }
 0x847   : > { %3487 = vmatprep.subr.mxu1 %v3762_v1 }
 0x848   : > { %v2599_v51 = vsel %vm1400_vm9, %v2461_v20, %v2598_v39 }
 0x849   : > { %v2387_v30 = vpop.xlane.xlu1 %2386  ;;  %v2384_v36 = vpop.xlane.xlu0 %2383  ;;  %v2600_v60 = vsel %vm1402_vm10, %v2465_v28, %v2599_v51 }
 0x84a   : > { %v2505_v12 = vrot.slane %v2387_v30, %v4049_v37  ;;  %v2501_v55 = vrot.slane %v2384_v36, %v4049_v37  ;;  %v2626_v2 = vmul.f32 %v2600_v60, %v4706_v27 }
 0x84c   : > { %v2608_v34 = vsel %vm1390_vm4, %v2505_v12, %v2501_v55  ;;  %v2638_v7 = vsel %vm2430_vm11, %v2626_v2, %v4706_v27 }
 0x84d   : > { %v2393_v29 = vpop.xlane.xlu1 %2392  ;;  %v2390_v25 = vpop.xlane.xlu0 %2389  ;;  %v2642_v17 = vmax.f32 %v2638_v7, 0.0 }
 0x84e   : > { %v2509_v45 = vrot.slane %v2390_v25, %v4049_v37  ;;  %v2513_v13 = vrot.slane %v2393_v29, %v4049_v37 }
 0x850   : > { %v2609_v0 = vsel %vm1392_vm5, %v2509_v45, %v2608_v34 }
 0x851   : > { %v2399_v31 = vpop.xlane.xlu1 %2398  ;;  %v2396_v11 = vpop.xlane.xlu0 %2395  ;;  %v2610_v63 = vsel %vm1394_vm6, %v2513_v13, %v2609_v0 }
 0x852   : > { %v2517_v62 = vrot.slane %v2396_v11, %v4049_v37  ;;  %v2521_v19 = vrot.slane %v2399_v31, %v4049_v37 }
 0x854   : > { %v2611_v61 = vsel %vm1396_vm7, %v2517_v62, %v2610_v63 }
 0x855   : > { %v2402_v54 = vpop.xlane.xlu0 %2401  ;;  %v2411_v10 = vpop.xlane.xlu1 %2410  ;;  %v2612_v4 = vsel %vm1398_vm8, %v2521_v19, %v2611_v61 }
 0x856   : > { %v2525_v52 = vrot.slane %v2402_v54, %v4049_v37 }
 0x858   : > { %v2613_v5 = vsel %vm1400_vm9, %v2525_v52, %v2612_v4 }
 0x859   : > { %v2405_v44 = vpop.xlane.xlu0 %2404  ;;  %v2414_v38 = vpop.xlane.xlu1 %2413 }
 0x85a   : > { %v2529_v23 = vrot.slane %v2405_v44, %v4049_v37 }
 0x85c   : > { %v2614_v9 = vsel %vm1402_vm10, %v2529_v23, %v2613_v5 }
 0x85d   : > { %v2408_v49 = vpop.xlane.xlu0 %2407  ;;  %v2417_v3 = vpop.xlane.xlu1 %2416  ;;  %v2628_v58 = vmul.f32 %v2614_v9, %v4728_v57 }
 0x85e   : > { %v2533_v48 = vrot.slane %v2408_v49, %v4049_v37  ;;  %v2545_v24 = vrot.slane %v2417_v3, %v4049_v37  ;;  %v3397_v49 = vld [vmem:[%s5036_s4] ss:$0 sm:$0xff] }
 0x85f   : > { %v2640_v27 = vsel %vm2432_vm12, %v2628_v58, %v4728_v57  ;;  %v2537_v57 = vrot.slane %v2411_v10, %v4049_v37 }
 0x860   : > { %v2644_v18 = vmax.f32 %v2640_v27, 0.0 }
 0x861   : > { %v2420_v21 = vpop.xlane.xlu0 %2419  ;;  %v2423_v16 = vpop.xlane.xlu1 %2422  ;;  %v2615_v26 = vsel %vm1390_vm4, %v2537_v57, %v2533_v48  ;;  %vm2433_vm4 = vcmp.gt.f32.partialorder %v4818_v56, 1.5 }
 0x862   : > { %v2549_v30 = vrot.slane %v2420_v21, %v4049_v37  ;;  %v2553_v29 = vrot.slane %v2423_v16, %v4049_v37 }
 0x865   : > { %v2426_v43 = vpop.xlane.xlu0 %2425  ;;  %v2949_v8 = vpop.permute.xlu1 %2948 }
 0x866   : > { %v2557_v53 = vrot.slane %v2426_v43, %v4049_v37 }
 0x869   : > { %v2651_v14 = vpop.permute.xlu0 %2650 }
 0x86a   : > { %3463 = vmatpush3.msra.mxu0 %v2651_v14 }
 0x86b   : > { %3465 = vmatmul.mubr.msk.f32.vlgmr.msra.gmra.mrb[4].mxu0 %vm412_vm2, %v2642_v17  ;;  %3472 = vmatprep.subr.mxu0 %v3762_v1 }
 0x86c   : > { %3473 = vmatpush3.msra.mxu0 %v2647_v42  ;;  %3474 = vmatprep.mubr.msk.f32.mxu0 %vm3761_vm0, %v3762_v1 }
 0x86d   : > { %3482 = vmatprep.subr.mxu0 %v3762_v1 }
 0x86f   : > { %3475 = vmatmul.mubr.msk.f32.vlgmr.msra.gmra.mrb[6].mxu0 %vm412_vm2, %v4866_v32  ;;  %v2541_v32 = vrot.slane %v2414_v38, %v4049_v37 }
 0x870   : > { %3483 = vmatpush3.msra.mxu0 %v2949_v8  ;;  %3484 = vmatprep.mubr.msk.f32.mxu0 %vm3761_vm0, %v3762_v1 }
 0x871   : > { %3492 = vmatprep.subr.mxu0 %v3762_v1  ;;  %v2616_v50 = vsel %vm1392_vm5, %v2541_v32, %v2615_v26 }
 0x872   : > { %v2617_v36 = vsel %vm1394_vm6, %v2545_v24, %v2616_v50 }
 0x873   : > { %3485 = vmatmul.mubr.msk.f32.vlgmr.msra.gmra.mrb[8].mxu0 %vm412_vm2, %v2644_v18  ;;  %v2618_v25 = vsel %vm1396_vm7, %v2549_v30, %v2617_v36 }
 0x874   : > { %3494 = vmatprep.mubr.msk.f32.mxu0 %vm3761_vm0, %v3762_v1  ;;  %v2619_v46 = vsel %vm1398_vm8, %v2553_v29, %v2618_v25 }
 0x875   : > { %v2620_v11 = vsel %vm1400_vm9, %v2557_v53, %v2619_v46 }
 0x896   : > { %v2429_v15 = vpop.xlane.xlu1 %2428 }
 0x897   : > { %v2561_v31 = vrot.slane %v2429_v15, %v4049_v37  ;;  %v2648_v37 = vld [vmem:[#allocation7 + $0x10] sm:$0xff] }
 0x899   : > { %v2621_v47 = vsel %vm1402_vm10, %v2561_v31, %v2620_v11 }
 0x89a   : > { %v2629_v33 = vmul.f32 %v2621_v47, %v4742_v6  ;;  %v3099_v22 = vpop.permute.xlu1 %3098 }
 0x89b   : > { %3493 = vmatpush3.msra.mxu0 %v3099_v22 }
 0x89c   : > { %v2641_v35 = vsel %vm2433_vm4, %v2629_v33, %v4742_v6 }
 0x89d   : > { %v2645_v54 = vmax.f32 %v2641_v35, 0.0 }
 0x89f   : > { %3495 = vmatmul.mubr.msk.f32.vlgmr.msra.gmra.mrb[10].mxu0 %vm412_vm2, %v2645_v54 }
 0x93e   : > { %v2722_v59 = vpop.f32.mrb[4].mxu0 }
 0x93f   : > { %v3466_v10 = vpop.f32.mrb[5].mxu0  ;;  %3480 = vmatmul.mubr.msk.f32.vlgmr.msra.gmra.mrb[8].mxu1 %vm412_vm2, %v2722_v59 }
 0x940   : > { %3488 = vmatpush3.msra.mxu1 %v2648_v37  ;;  %3489 = vmatprep.mubr.msk.f32.mxu1 %vm3761_vm0, %v3762_v1 }
 0x941   : > { %3497 = vmatprep.subr.mxu1 %v3762_v1 }
 0x942   : > { %v2871_v56 = vpop.f32.mrb[6].mxu0 }
 0x943   : > { %v3476_v6 = vpop.f32.mrb[7].mxu0 }
 0x946   : > { %v3020_v20 = vpop.f32.mrb[8].mxu0 }
 0x947   : > { %v3486_v12 = vpop.f32.mrb[9].mxu0  ;;  %3490 = vmatmul.mubr.msk.f32.vlgmr.msra.gmra.mrb[10].mxu1 %vm412_vm2, %v3020_v20 }
 0x948   : > { %3498 = vmatpush3.msra.mxu1 %v2649_v41  ;;  %3499 = vmatprep.mubr.msk.f32.mxu1 %vm3761_vm0, %v3762_v1 }
 0x972   : > { %v3170_v55 = vpop.f32.mrb[10].mxu0 }
 0x973   : > { %v3496_v44 = vpop.f32.mrb[11].mxu0  ;;  %3500 = vmatmul.mubr.msk.f32.vlgmr.msra.gmra.mrb[12].mxu1 %vm412_vm2, %v3170_v55 }
 0xa12   : > { %v2944_v45 = vpop.f32.mrb[8].mxu1 }
 0xa13   : > { %v2945_v28 = vadd.f32 %v2944_v45, %v2871_v56  ;;  %v3481_v39 = vpop.f32.mrb[9].mxu1 }
 0xa1a   : > { %v3093_v51 = vpop.f32.mrb[10].mxu1 }
 0xa1b   : > { %v3097_v34 = vadd.f32 %v3093_v51, %v2945_v28  ;;  %v3491_v13 = vpop.f32.mrb[11].mxu1 }
 0xa46   : > { %v3243_v38 = vpop.f32.mrb[12].mxu1 }
 0xa47   : > { %v3247_v1 = vadd.f32 %v3243_v38, %v3097_v34  ;;  %v3501_v0 = vpop.f32.mrb[13].mxu1 }
 0xa49   : > { %v3255_v62 = vadd.f32 %v3397_v49, %v3247_v1 }
 0xa4b   : > { %3256 = vst.msk [vmem:[%s322_s23] sm:$0xff] %vm335_vm1, %v3255_v62 }
 0xa4c   : > { %3696 = shalt.err (!%p3693_p2)
}
 0xa4d   : > { %s3697_s12 = scalar_lea.hbm %s4987_s20, 128  ;;  %s3701_s15 = scalar_lea.hbm %s5039_s7, 256 }
 0xa4e   : > { %p3698_p13 = scmp.ne.s32.totalorder %s4987_s20, %s3697_s12  ;;  %p3702_p4 = scmp.lt.u32.totalorder %s4987_s20, %s5039_s7 }
 0xa4f   : > { %p3703_p5 = scmp.lt.u32.totalorder %s3701_s15, %s3697_s12  ;;  %p3705_p11 = scmp.lt.u32.totalorder %s3697_s12, %s4987_s20 }
 0xa50   : > { %p3699_p6 = pnand %p3698_p13, %p5053_p0 }
 0xa51   : > { %p3704_p8 = por %p3703_p5, %p3702_p4 }
 0xa52   : > { %p3700_p10 = pneg %p3699_p6 }
 0xa53   : > { %p3706_p1 = por %p3705_p11, %p3704_p8 }
 0xa55   : > { %p3707_p3 = pnand %p3706_p1, %p3700_p10 }
 0xa57   : > { %3710 = shalt.err (!%p3707_p3)
}
 0xa58   : > { %3518 = dma.vmem_to_hbm [thread:$0]  (%p5053_p0), %s4989_s29, 128, %s4987_s20, %s3258_s11  }
 0xa59 PF: > { %s3283_s30 = sand.u32 1, %s3741_s24   ;;  %p5054_p7 = scmp.ne.s32.totalorder %s5044_s8, 0 }
 0xa5a   : > { %p5055_p9 = scmp.ge.s32.totalorder %s3753_s27, 2  ;;  %s3284_s9 = scalar_lea.sflag [#allocation4], %s3283_s30 }
 0xa5c   : > { %p3532_p12 = pnand %p5055_p9, %p5054_p7 }
 0xa5e   : > { %3736 = dma.done.wait (!%p3532_p12), %s3284_s9, 128  }
 0xa5f   : > { %3738 = vsyncadd (!%p3532_p12), %s3284_s9, 4294967168  ;;  %p21_p2 = scmp.ge.s32.totalorder %s3926_s13, 4   ;;  %s5056_s24 = smov %s3745_s25 }
 0xa60   : > { %s5057_s25 = smov %s3749_s26  ;;  %s5058_s26 = smov %s3942_s17 }
 0xa61   : > { %s5059_s27 = smov %s3926_s13  ;;  %23 = sbr.rel (!%p21_p2) target bundleno = 6 (0x6), region = 101 }
 0xa68   :  { %3289 = vsyncpa [#allocation3], 1 }
 0xa69   :  { %3291 = vsyncpa [#allocation3 + $0x1], 1 }
 0xa6a   :  { %3292 = vsyncpa [#allocation6], 1 }
 0xa6b   :  { %3293 = vsyncpa [#allocation4], 1 }
 0xa6c   :  { %3295 = vsyncpa [#allocation4 + $0x1], 1 }

</bundles_post_ra>
